<compile_context>
chip_gen: v7x
topology: tpu7x:2x2x1
jax: 0.10.0
libtpu: 0.0.40
codegen_flags: <defaults>
</compile_context>

<pallas_src>
import math
import functools

import jax
import jax.numpy as jnp
from jax.experimental import pallas as pl
from jax.experimental.pallas import tpu as pltpu

DIM_K = 128
DIM_V = 256
FEAT_DIM = 2048
SEQ = 4                               # [scene, face1, face2, head_embedding]
DV_FOLD = SEQ                         # V folded through fc1/fc2/fc3 -> 4 columns
QKV_W = 2 * DIM_K + DV_FOLD           # 260 = [Q | K | V@head]
NORM = 1.0 / math.sqrt(DIM_K)         # Attention.norm in the PyTorch module
ATT_SCALE = 1.0 / NORM                # PyTorch does softmax(scores) / norm


# --------------------------------------------------------------------------
# Fused kernel: per-stream [Q|K|V-fold] projection -> packed attention -> out
# --------------------------------------------------------------------------
def _fused_kernel(pf1_ref, pf2_ref, ps_ref, he_ref,
                  wf_ref, bf_ref, ws_ref, bs_ref,
                  wqkv_ref, bqkv_ref, bhead_ref,
                  out_ref, *, att_scale):
    # ---- per-stream fused [Q | K | V-folded] projections -----------------
    # face/scene backbones + fc + QKV already folded into (3, 260) maps.
    qkv_sc = jnp.dot(ps_ref[...], ws_ref[...],
                     preferred_element_type=jnp.float32) + bs_ref[...]       # (Bt, 260)
    qkv_f1 = jnp.dot(pf1_ref[...], wf_ref[...],
                     preferred_element_type=jnp.float32) + bf_ref[...]       # (Bt, 260)
    qkv_f2 = jnp.dot(pf2_ref[...], wf_ref[...],
                     preferred_element_type=jnp.float32) + bf_ref[...]       # (Bt, 260)
    # head-embedding stream keeps the only big matmul; bf16 on the MXU.
    qkv_he = jnp.dot(he_ref[...].astype(jnp.bfloat16), wqkv_ref[...],
                     preferred_element_type=jnp.float32) + bqkv_ref[...]     # (Bt, 260)

    # seq order matches torch.concat([scene, face1, face2, head], dim=1)
    qkv = (qkv_sc, qkv_f1, qkv_f2, qkv_he)
    Q = [t[:, :DIM_K] for t in qkv]                       # 4 x (Bt, 128)
    K = [t[:, DIM_K:2 * DIM_K] for t in qkv]              # 4 x (Bt, 128)
    Vf = [t[:, 2 * DIM_K:] for t in qkv]                  # 4 x (Bt, 4); col i = V_j @ whead_i

    # ---- attention scores packed lane-dense: (Bt, 16), col 4*j+i = s(i,j) --
    # This layout makes every group-over-j sum a contiguous 4-lane slice add.
    scores = [jnp.sum(Q[i] * K[j], axis=-1, keepdims=True)      # (Bt, 1)
              for j in range(SEQ) for i in range(SEQ)]
    S = jnp.concatenate(scores, axis=-1)                        # (Bt, 16)

    # exact per-query-group max (same grouping trick): col i of M = max_j s(i,j)
    M = jnp.maximum(jnp.maximum(S[:, 0:4], S[:, 4:8]),
                    jnp.maximum(S[:, 8:12], S[:, 12:16]))       # (Bt, 4)
    E = jnp.exp(S - jnp.concatenate([M, M, M, M], axis=-1))     # (Bt, 16), one EUP pass

    V_all = jnp.concatenate(Vf, axis=-1)                        # (Bt, 16), col 4*j+i = V_j@w_i
    P = E * V_all

    # group-over-j sums: col i of D / A is sum_j of col (4*j + i)
    D = E[:, 0:4] + E[:, 4:8] + E[:, 8:12] + E[:, 12:16]        # (Bt, 4) softmax denoms
    A = P[:, 0:4] + P[:, 4:8] + P[:, 8:12] + P[:, 12:16]        # (Bt, 4) unnormalized outs

    inv = pl.reciprocal(D, approx=True) * att_scale             # EUP; post-softmax /norm folded
    y = jnp.sum(A * inv, axis=-1, keepdims=True) + bhead_ref[...]
    out_ref[...] = y.astype(out_ref.dtype)


def _tile_and_pad(B):
    """Pick a batch tile and the padded batch size (multiple of the tile)."""
    if B >= 512:
        bt = 256          # fills v6e/v7x 256-wide MXU, still >=2 grid steps (v7x megacore)
    elif B > 128:
        bt = 128          # >=2 grid steps; matches v5e's 128-wide MXU
    else:
        bt = min(128, max(8, int(pl.next_power_of_2(B))))   # single padded tile, >=8 sublanes
    return bt, pl.cdiv(B, bt) * bt


# --------------------------------------------------------------------------
# Model wrapper (pooling + all weight folding in XLA, everything else Pallas)
# --------------------------------------------------------------------------
def gaze_pattern_model_v2(p, face_imgs, scene_imgs, head_embeddings):
    B = face_imgs.shape[0]
    c_half = face_imgs.shape[1] // 2

    # Global average pool in XLA; only (B, C) pooled vectors enter the kernel.
    pooled_f1 = face_imgs[:, :c_half].mean(axis=(2, 3))                    # (B, 3)
    pooled_f2 = face_imgs[:, c_half:].mean(axis=(2, 3))                    # (B, 3)
    pooled_sc = scene_imgs.mean(axis=(2, 3))                               # (B, 3)
    head = head_embeddings[:, 0, :]                                        # (B, 2048)

    # ---- weight folding (f32, trace time) --------------------------------
    # fc1/fc2/fc3 have no nonlinearity between them -> one (1024, 1) map.
    whead = p["fc1_w"].T @ p["fc2_w"].T @ p["fc3_w"].T                     # (1024, 1)
    bhead = (p["fc1_b"] @ p["fc2_w"].T @ p["fc3_w"].T
             + p["fc2_b"] @ p["fc3_w"].T + p["fc3_b"]).reshape(1, 1)       # (1, 1)
    # Fold whead into V: col i of wv_fold = Wv.T @ whead[256*i : 256*(i+1)]
    w_stack = whead.reshape(SEQ, DIM_V).T                                  # (256, 4)
    wv_fold = p["wv"].T @ w_stack                                          # (2048, 4)
    bv_fold = (p["bv"] @ w_stack).reshape(1, DV_FOLD)                      # (1, 4)

    # Fused [Q | K | V-folded] projection: (2048, 260) + (1, 260)
    wqkv = jnp.concatenate([p["wq"].T, p["wk"].T, wv_fold], axis=1)
    bqkv = jnp.concatenate([p["bq"].reshape(1, -1),
                            p["bk"].reshape(1, -1), bv_fold], axis=1)

    # Fold stand-in backbone projection + module fc + QKV into (3, 260) maps.
    wface = (p["face_proj"] @ p["face_fc_w"].T) @ wqkv                     # (3, 260)
    bface = p["face_fc_b"].reshape(1, -1) @ wqkv + bqkv                    # (1, 260)
    wscene = (p["scene_proj"] @ p["scene_fc_w"].T) @ wqkv                  # (3, 260)
    bscene = p["scene_fc_b"].reshape(1, -1) @ wqkv + bqkv                  # (1, 260)

    wqkv_bf16 = wqkv.astype(jnp.bfloat16)     # only the head stream uses it (bf16 MXU)

    bt, b_pad = _tile_and_pad(B)
    if b_pad != B:
        pad = ((0, b_pad - B), (0, 0))
        pooled_f1 = jnp.pad(pooled_f1, pad)
        pooled_f2 = jnp.pad(pooled_f2, pad)
        pooled_sc = jnp.pad(pooled_sc, pad)
        head = jnp.pad(head, pad)

    Cf = pooled_f1.shape[1]
    Cs = pooled_sc.shape[1]

    def batch_spec(last):
        return pl.BlockSpec((bt, last), lambda b: (b, 0))

    def const_spec(shape):
        return pl.BlockSpec(shape, lambda b: (0, 0))

    out = pl.pallas_call(
        functools.partial(_fused_kernel, att_scale=ATT_SCALE),
        out_shape=jax.ShapeDtypeStruct((b_pad, 1), jnp.float32),
        grid=(b_pad // bt,),
        in_specs=[
            batch_spec(Cf), batch_spec(Cf), batch_spec(Cs), batch_spec(FEAT_DIM),
            const_spec((Cf, QKV_W)), const_spec((1, QKV_W)),
            const_spec((Cs, QKV_W)), const_spec((1, QKV_W)),
            const_spec((FEAT_DIM, QKV_W)), const_spec((1, QKV_W)),
            const_spec((1, 1)),
        ],
        out_specs=pl.BlockSpec((bt, 1), lambda b: (b, 0)),
        compiler_params=pltpu.CompilerParams(
            dimension_semantics=("parallel",),
            vmem_limit_bytes=48 * 1024 * 1024,   # safe on v5e/v6e/v7x
        ),
    )(pooled_f1, pooled_f2, pooled_sc, head,
      wface, bface, wscene, bscene, wqkv_bf16, bqkv, bhead)
    return out[:B]


# --------------------------------------------------------------------------
# Deterministic parameter init (shapes from the module's __init__)
# --------------------------------------------------------------------------
def init_params(key):
    ks = jax.random.split(key, 20)

    def kaiming(k, out_f, in_f):
        return jax.random.normal(k, (out_f, in_f), jnp.float32) * math.sqrt(2.0 / in_f)

    def bias(k, n):
        return jax.random.normal(k, (n,), jnp.float32) * 0.01

    p = {}
    # stand-in projections replacing the conv backbones (deterministic)
    p["face_proj"] = jax.random.normal(ks[0], (3, 512), jnp.float32) / math.sqrt(3.0)
    p["scene_proj"] = jax.random.normal(ks[1], (3, 2048), jnp.float32) / math.sqrt(3.0)
    # extractor_face.fc: Linear(512, 2048); extractor_scene.fc: Linear(2048, 2048)
    p["face_fc_w"] = kaiming(ks[2], 2048, 512)
    p["face_fc_b"] = bias(ks[3], 2048)
    p["scene_fc_w"] = kaiming(ks[4], 2048, 2048)
    p["scene_fc_b"] = bias(ks[5], 2048)
    # Attention(2048, 128, 256)
    p["wq"] = kaiming(ks[6], DIM_K, FEAT_DIM);  p["bq"] = bias(ks[7], DIM_K)
    p["wk"] = kaiming(ks[8], DIM_K, FEAT_DIM);  p["bk"] = bias(ks[9], DIM_K)
    p["wv"] = kaiming(ks[10], DIM_V, FEAT_DIM); p["bv"] = bias(ks[11], DIM_V)
    # head
    p["fc1_w"] = kaiming(ks[12], 128, 1024); p["fc1_b"] = bias(ks[13], 128)
    p["fc2_w"] = kaiming(ks[14], 32, 128);   p["fc2_b"] = bias(ks[15], 32)
    p["fc3_w"] = kaiming(ks[16], 1, 32);     p["fc3_b"] = bias(ks[17], 1)
    return p


# --------------------------------------------------------------------------
# Pure-JAX reference (un-folded math) for a correctness check
# --------------------------------------------------------------------------
def reference_forward(p, face_imgs, scene_imgs, head_embeddings):
    def extract(img, proj, w, b):
        pooled = img.reshape(img.shape[0], img.shape[1], -1).mean(axis=2)
        pen = pooled @ proj
        return (pen @ w.T + b)[:, None, :]

    c = face_imgs.shape[1] // 2
    f1 = extract(face_imgs[:, :c], p["face_proj"], p["face_fc_w"], p["face_fc_b"])
    f2 = extract(face_imgs[:, c:], p["face_proj"], p["face_fc_w"], p["face_fc_b"])
    sc = extract(scene_imgs, p["scene_proj"], p["scene_fc_w"], p["scene_fc_b"])
    x = jnp.concatenate([sc, f1, f2, head_embeddings], axis=1)

    Q = x @ p["wq"].T + p["bq"]
    K = x @ p["wk"].T + p["bk"]
    V = x @ p["wv"].T + p["bv"]
    scores = jnp.einsum("bsk,btk->bst", Q, K)
    att = jax.nn.softmax(scores, axis=-1) / NORM
    o = jnp.einsum("bst,btv->bsv", att, V)
    flat = o.reshape(o.shape[0], -1)
    h = flat @ p["fc1_w"].T + p["fc1_b"]
    h = h @ p["fc2_w"].T + p["fc2_b"]
    return h @ p["fc3_w"].T + p["fc3_b"]


if __name__ == "__main__":
    key = jax.random.PRNGKey(0)
    kp, k1, k2, k3 = jax.random.split(key, 4)
    params = init_params(kp)

    B, H, W = 2, 16, 16
    face_imgs = jax.random.normal(k1, (B, 6, H, W), jnp.float32)      # NCHW, 6 = two RGB faces
    scene_imgs = jax.random.normal(k2, (B, 3, H, W), jnp.float32)     # NCHW
    head_embeddings = jax.random.normal(k3, (B, 1, 2048), jnp.float32)

    out = gaze_pattern_model_v2(params, face_imgs, scene_imgs, head_embeddings)
    out = jax.block_until_ready(out)

    ref = reference_forward(params, face_imgs, scene_imgs, head_embeddings)
    assert out.shape == (B, 1), out.shape
    assert bool(jnp.all(jnp.isfinite(out))), out
    rel_err = jnp.linalg.norm(out - ref) / (jnp.linalg.norm(ref) + 1e-6)
    assert rel_err < 2e-2, (rel_err, out, ref)   # bf16 matmul + approx reciprocal tolerance

    print("KERNEL_OK")
</pallas_src>

<mosaic_0001>
module attributes {stable_mosaic.version = 11 : i64} {
  func.func @_fused_kernel(%arg0: i32, %arg1: memref<8x3xf32, #tpu.memory_space<vmem>>, %arg2: memref<8x3xf32, #tpu.memory_space<vmem>>, %arg3: memref<8x3xf32, #tpu.memory_space<vmem>>, %arg4: memref<8x2048xf32, #tpu.memory_space<vmem>>, %arg5: memref<3x260xf32, #tpu.memory_space<vmem>>, %arg6: memref<1x260xf32, #tpu.memory_space<vmem>>, %arg7: memref<3x260xf32, #tpu.memory_space<vmem>>, %arg8: memref<1x260xf32, #tpu.memory_space<vmem>>, %arg9: memref<2048x260xbf16, #tpu.memory_space<vmem>>, %arg10: memref<1x260xf32, #tpu.memory_space<vmem>>, %arg11: memref<1x1xf32, #tpu.memory_space<vmem>>, %arg12: memref<8x1xf32, #tpu.memory_space<vmem>>) attributes {dimension_semantics = [#tpu.dimension_semantics<parallel>], iteration_bounds = array<i64: 1>, scalar_prefetch = 0 : i64, scratch_operands = 0 : i64, tpu.core_type = #tpu.core_type<tc>, window_params = [{transform_indices = @transform_0, window_bounds = array<i64: 8, 3>}, {transform_indices = @transform_1, window_bounds = array<i64: 8, 3>}, {transform_indices = @transform_2, window_bounds = array<i64: 8, 3>}, {transform_indices = @transform_3, window_bounds = array<i64: 8, 2048>}, {pipeline_mode = #tpu.pipeline_mode<synchronous>, transform_indices = @transform_4, window_bounds = array<i64: 3, 260>}, {pipeline_mode = #tpu.pipeline_mode<synchronous>, transform_indices = @transform_5, window_bounds = array<i64: 1, 260>}, {pipeline_mode = #tpu.pipeline_mode<synchronous>, transform_indices = @transform_6, window_bounds = array<i64: 3, 260>}, {pipeline_mode = #tpu.pipeline_mode<synchronous>, transform_indices = @transform_7, window_bounds = array<i64: 1, 260>}, {pipeline_mode = #tpu.pipeline_mode<synchronous>, transform_indices = @transform_8, window_bounds = array<i64: 2048, 260>}, {pipeline_mode = #tpu.pipeline_mode<synchronous>, transform_indices = @transform_9, window_bounds = array<i64: 1, 260>}, {pipeline_mode = #tpu.pipeline_mode<synchronous>, transform_indices = @transform_10, window_bounds = array<i64: 1, 1>}, {transform_indices = @transform_11, window_bounds = array<i64: 8, 1>}]} {
    %c0 = arith.constant 0 : index
    %c0_0 = arith.constant 0 : index
    %0 = vector.load %arg3[%c0, %c0_0] : memref<8x3xf32, #tpu.memory_space<vmem>>, vector<8x3xf32>
    %c0_1 = arith.constant 0 : index
    %c0_2 = arith.constant 0 : index
    %1 = vector.load %arg7[%c0_1, %c0_2] : memref<3x260xf32, #tpu.memory_space<vmem>>, vector<3x260xf32>
    %cst = arith.constant dense<0.000000e+00> : vector<8x260xf32>
    %2 = tpu.matmul %0, %1, %cst {dimension_numbers = #tpu.dot_dimension_numbers<[1], [0], [0], [1], [0, 0, 1, 1], [], []>} : vector<8x3xf32>, vector<3x260xf32>, vector<8x260xf32> -> vector<8x260xf32>
    %c0_3 = arith.constant 0 : index
    %c0_4 = arith.constant 0 : index
    %3 = vector.load %arg8[%c0_3, %c0_4] : memref<1x260xf32, #tpu.memory_space<vmem>>, vector<1x260xf32>
    %4 = vector.broadcast %3 : vector<1x260xf32> to vector<8x260xf32>
    %5 = arith.addf %2, %4 : vector<8x260xf32>
    %c0_5 = arith.constant 0 : index
    %c0_6 = arith.constant 0 : index
    %6 = vector.load %arg1[%c0_5, %c0_6] : memref<8x3xf32, #tpu.memory_space<vmem>>, vector<8x3xf32>
    %c0_7 = arith.constant 0 : index
    %c0_8 = arith.constant 0 : index
    %7 = vector.load %arg5[%c0_7, %c0_8] : memref<3x260xf32, #tpu.memory_space<vmem>>, vector<3x260xf32>
    %cst_9 = arith.constant dense<0.000000e+00> : vector<8x260xf32>
    %8 = tpu.matmul %6, %7, %cst_9 {dimension_numbers = #tpu.dot_dimension_numbers<[1], [0], [0], [1], [0, 0, 1, 1], [], []>} : vector<8x3xf32>, vector<3x260xf32>, vector<8x260xf32> -> vector<8x260xf32>
    %c0_10 = arith.constant 0 : index
    %c0_11 = arith.constant 0 : index
    %9 = vector.load %arg6[%c0_10, %c0_11] : memref<1x260xf32, #tpu.memory_space<vmem>>, vector<1x260xf32>
    %10 = vector.broadcast %9 : vector<1x260xf32> to vector<8x260xf32>
    %11 = arith.addf %8, %10 : vector<8x260xf32>
    %c0_12 = arith.constant 0 : index
    %c0_13 = arith.constant 0 : index
    %12 = vector.load %arg2[%c0_12, %c0_13] : memref<8x3xf32, #tpu.memory_space<vmem>>, vector<8x3xf32>
    %c0_14 = arith.constant 0 : index
    %c0_15 = arith.constant 0 : index
    %13 = vector.load %arg5[%c0_14, %c0_15] : memref<3x260xf32, #tpu.memory_space<vmem>>, vector<3x260xf32>
    %cst_16 = arith.constant dense<0.000000e+00> : vector<8x260xf32>
    %14 = tpu.matmul %12, %13, %cst_16 {dimension_numbers = #tpu.dot_dimension_numbers<[1], [0], [0], [1], [0, 0, 1, 1], [], []>} : vector<8x3xf32>, vector<3x260xf32>, vector<8x260xf32> -> vector<8x260xf32>
    %c0_17 = arith.constant 0 : index
    %c0_18 = arith.constant 0 : index
    %15 = vector.load %arg6[%c0_17, %c0_18] : memref<1x260xf32, #tpu.memory_space<vmem>>, vector<1x260xf32>
    %16 = vector.broadcast %15 : vector<1x260xf32> to vector<8x260xf32>
    %17 = arith.addf %14, %16 : vector<8x260xf32>
    %c0_19 = arith.constant 0 : index
    %c0_20 = arith.constant 0 : index
    %18 = vector.load %arg4[%c0_19, %c0_20] : memref<8x2048xf32, #tpu.memory_space<vmem>>, vector<8x2048xf32>
    %19 = arith.truncf %18 : vector<8x2048xf32> to vector<8x2048xbf16>
    %c0_21 = arith.constant 0 : index
    %c0_22 = arith.constant 0 : index
    %20 = vector.load %arg9[%c0_21, %c0_22] : memref<2048x260xbf16, #tpu.memory_space<vmem>>, vector<2048x260xbf16>
    %cst_23 = arith.constant dense<0.000000e+00> : vector<8x260xf32>
    %21 = tpu.matmul %19, %20, %cst_23 {dimension_numbers = #tpu.dot_dimension_numbers<[1], [0], [0], [1], [0, 0, 1, 1], [], []>} : vector<8x2048xbf16>, vector<2048x260xbf16>, vector<8x260xf32> -> vector<8x260xf32>
    %c0_24 = arith.constant 0 : index
    %c0_25 = arith.constant 0 : index
    %22 = vector.load %arg10[%c0_24, %c0_25] : memref<1x260xf32, #tpu.memory_space<vmem>>, vector<1x260xf32>
    %23 = vector.broadcast %22 : vector<1x260xf32> to vector<8x260xf32>
    %24 = arith.addf %21, %23 : vector<8x260xf32>
    %25 = vector.extract_strided_slice %5 {offsets = [0, 0], sizes = [8, 128], strides = [1, 1]} : vector<8x260xf32> to vector<8x128xf32>
    %26 = vector.extract_strided_slice %11 {offsets = [0, 0], sizes = [8, 128], strides = [1, 1]} : vector<8x260xf32> to vector<8x128xf32>
    %27 = vector.extract_strided_slice %17 {offsets = [0, 0], sizes = [8, 128], strides = [1, 1]} : vector<8x260xf32> to vector<8x128xf32>
    %28 = vector.extract_strided_slice %24 {offsets = [0, 0], sizes = [8, 128], strides = [1, 1]} : vector<8x260xf32> to vector<8x128xf32>
    %29 = vector.extract_strided_slice %5 {offsets = [0, 128], sizes = [8, 128], strides = [1, 1]} : vector<8x260xf32> to vector<8x128xf32>
    %30 = vector.extract_strided_slice %11 {offsets = [0, 128], sizes = [8, 128], strides = [1, 1]} : vector<8x260xf32> to vector<8x128xf32>
    %31 = vector.extract_strided_slice %17 {offsets = [0, 128], sizes = [8, 128], strides = [1, 1]} : vector<8x260xf32> to vector<8x128xf32>
    %32 = vector.extract_strided_slice %24 {offsets = [0, 128], sizes = [8, 128], strides = [1, 1]} : vector<8x260xf32> to vector<8x128xf32>
    %33 = vector.extract_strided_slice %5 {offsets = [0, 256], sizes = [8, 4], strides = [1, 1]} : vector<8x260xf32> to vector<8x4xf32>
    %34 = vector.extract_strided_slice %11 {offsets = [0, 256], sizes = [8, 4], strides = [1, 1]} : vector<8x260xf32> to vector<8x4xf32>
    %35 = vector.extract_strided_slice %17 {offsets = [0, 256], sizes = [8, 4], strides = [1, 1]} : vector<8x260xf32> to vector<8x4xf32>
    %36 = vector.extract_strided_slice %24 {offsets = [0, 256], sizes = [8, 4], strides = [1, 1]} : vector<8x260xf32> to vector<8x4xf32>
    %37 = arith.mulf %25, %29 : vector<8x128xf32>
    %cst_26 = arith.constant dense<0.000000e+00> : vector<8xf32>
    %38 = vector.multi_reduction <add>, %37, %cst_26 [1] : vector<8x128xf32> to vector<8xf32>
    %39 = vector.shape_cast %38 : vector<8xf32> to vector<8x1xf32>
    %40 = arith.mulf %26, %29 : vector<8x128xf32>
    %cst_27 = arith.constant dense<0.000000e+00> : vector<8xf32>
    %41 = vector.multi_reduction <add>, %40, %cst_27 [1] : vector<8x128xf32> to vector<8xf32>
    %42 = vector.shape_cast %41 : vector<8xf32> to vector<8x1xf32>
    %43 = arith.mulf %27, %29 : vector<8x128xf32>
    %cst_28 = arith.constant dense<0.000000e+00> : vector<8xf32>
    %44 = vector.multi_reduction <add>, %43, %cst_28 [1] : vector<8x128xf32> to vector<8xf32>
    %45 = vector.shape_cast %44 : vector<8xf32> to vector<8x1xf32>
    %46 = arith.mulf %28, %29 : vector<8x128xf32>
    %cst_29 = arith.constant dense<0.000000e+00> : vector<8xf32>
    %47 = vector.multi_reduction <add>, %46, %cst_29 [1] : vector<8x128xf32> to vector<8xf32>
    %48 = vector.shape_cast %47 : vector<8xf32> to vector<8x1xf32>
    %49 = arith.mulf %25, %30 : vector<8x128xf32>
    %cst_30 = arith.constant dense<0.000000e+00> : vector<8xf32>
    %50 = vector.multi_reduction <add>, %49, %cst_30 [1] : vector<8x128xf32> to vector<8xf32>
    %51 = vector.shape_cast %50 : vector<8xf32> to vector<8x1xf32>
    %52 = arith.mulf %26, %30 : vector<8x128xf32>
    %cst_31 = arith.constant dense<0.000000e+00> : vector<8xf32>
    %53 = vector.multi_reduction <add>, %52, %cst_31 [1] : vector<8x128xf32> to vector<8xf32>
    %54 = vector.shape_cast %53 : vector<8xf32> to vector<8x1xf32>
    %55 = arith.mulf %27, %30 : vector<8x128xf32>
    %cst_32 = arith.constant dense<0.000000e+00> : vector<8xf32>
    %56 = vector.multi_reduction <add>, %55, %cst_32 [1] : vector<8x128xf32> to vector<8xf32>
    %57 = vector.shape_cast %56 : vector<8xf32> to vector<8x1xf32>
    %58 = arith.mulf %28, %30 : vector<8x128xf32>
    %cst_33 = arith.constant dense<0.000000e+00> : vector<8xf32>
    %59 = vector.multi_reduction <add>, %58, %cst_33 [1] : vector<8x128xf32> to vector<8xf32>
    %60 = vector.shape_cast %59 : vector<8xf32> to vector<8x1xf32>
    %61 = arith.mulf %25, %31 : vector<8x128xf32>
    %cst_34 = arith.constant dense<0.000000e+00> : vector<8xf32>
    %62 = vector.multi_reduction <add>, %61, %cst_34 [1] : vector<8x128xf32> to vector<8xf32>
    %63 = vector.shape_cast %62 : vector<8xf32> to vector<8x1xf32>
    %64 = arith.mulf %26, %31 : vector<8x128xf32>
    %cst_35 = arith.constant dense<0.000000e+00> : vector<8xf32>
    %65 = vector.multi_reduction <add>, %64, %cst_35 [1] : vector<8x128xf32> to vector<8xf32>
    %66 = vector.shape_cast %65 : vector<8xf32> to vector<8x1xf32>
    %67 = arith.mulf %27, %31 : vector<8x128xf32>
    %cst_36 = arith.constant dense<0.000000e+00> : vector<8xf32>
    %68 = vector.multi_reduction <add>, %67, %cst_36 [1] : vector<8x128xf32> to vector<8xf32>
    %69 = vector.shape_cast %68 : vector<8xf32> to vector<8x1xf32>
    %70 = arith.mulf %28, %31 : vector<8x128xf32>
    %cst_37 = arith.constant dense<0.000000e+00> : vector<8xf32>
    %71 = vector.multi_reduction <add>, %70, %cst_37 [1] : vector<8x128xf32> to vector<8xf32>
    %72 = vector.shape_cast %71 : vector<8xf32> to vector<8x1xf32>
    %73 = arith.mulf %25, %32 : vector<8x128xf32>
    %cst_38 = arith.constant dense<0.000000e+00> : vector<8xf32>
    %74 = vector.multi_reduction <add>, %73, %cst_38 [1] : vector<8x128xf32> to vector<8xf32>
    %75 = vector.shape_cast %74 : vector<8xf32> to vector<8x1xf32>
    %76 = arith.mulf %26, %32 : vector<8x128xf32>
    %cst_39 = arith.constant dense<0.000000e+00> : vector<8xf32>
    %77 = vector.multi_reduction <add>, %76, %cst_39 [1] : vector<8x128xf32> to vector<8xf32>
    %78 = vector.shape_cast %77 : vector<8xf32> to vector<8x1xf32>
    %79 = arith.mulf %27, %32 : vector<8x128xf32>
    %cst_40 = arith.constant dense<0.000000e+00> : vector<8xf32>
    %80 = vector.multi_reduction <add>, %79, %cst_40 [1] : vector<8x128xf32> to vector<8xf32>
    %81 = vector.shape_cast %80 : vector<8xf32> to vector<8x1xf32>
    %82 = arith.mulf %28, %32 : vector<8x128xf32>
    %cst_41 = arith.constant dense<0.000000e+00> : vector<8xf32>
    %83 = vector.multi_reduction <add>, %82, %cst_41 [1] : vector<8x128xf32> to vector<8xf32>
    %84 = vector.shape_cast %83 : vector<8xf32> to vector<8x1xf32>
    %85 = tpu.concatenate %39, %42, %45, %48, %51, %54, %57, %60, %63, %66, %69, %72, %75, %78, %81, %84 in 1 : vector<8x1xf32>, vector<8x1xf32>, vector<8x1xf32>, vector<8x1xf32>, vector<8x1xf32>, vector<8x1xf32>, vector<8x1xf32>, vector<8x1xf32>, vector<8x1xf32>, vector<8x1xf32>, vector<8x1xf32>, vector<8x1xf32>, vector<8x1xf32>, vector<8x1xf32>, vector<8x1xf32>, vector<8x1xf32> -> vector<8x16xf32>
    %86 = vector.extract_strided_slice %85 {offsets = [0, 0], sizes = [8, 4], strides = [1, 1]} : vector<8x16xf32> to vector<8x4xf32>
    %87 = vector.extract_strided_slice %85 {offsets = [0, 4], sizes = [8, 4], strides = [1, 1]} : vector<8x16xf32> to vector<8x4xf32>
    %88 = arith.maximumf %86, %87 : vector<8x4xf32>
    %89 = vector.extract_strided_slice %85 {offsets = [0, 8], sizes = [8, 4], strides = [1, 1]} : vector<8x16xf32> to vector<8x4xf32>
    %90 = vector.extract_strided_slice %85 {offsets = [0, 12], sizes = [8, 4], strides = [1, 1]} : vector<8x16xf32> to vector<8x4xf32>
    %91 = arith.maximumf %89, %90 : vector<8x4xf32>
    %92 = arith.maximumf %88, %91 : vector<8x4xf32>
    %93 = tpu.concatenate %92, %92, %92, %92 in 1 : vector<8x4xf32>, vector<8x4xf32>, vector<8x4xf32>, vector<8x4xf32> -> vector<8x16xf32>
    %94 = arith.subf %85, %93 : vector<8x16xf32>
    %95 = math.exp %94 : vector<8x16xf32>
    %96 = tpu.concatenate %33, %34, %35, %36 in 1 : vector<8x4xf32>, vector<8x4xf32>, vector<8x4xf32>, vector<8x4xf32> -> vector<8x16xf32>
    %97 = arith.mulf %95, %96 : vector<8x16xf32>
    %98 = vector.extract_strided_slice %95 {offsets = [0, 0], sizes = [8, 4], strides = [1, 1]} : vector<8x16xf32> to vector<8x4xf32>
    %99 = vector.extract_strided_slice %95 {offsets = [0, 4], sizes = [8, 4], strides = [1, 1]} : vector<8x16xf32> to vector<8x4xf32>
    %100 = arith.addf %98, %99 : vector<8x4xf32>
    %101 = vector.extract_strided_slice %95 {offsets = [0, 8], sizes = [8, 4], strides = [1, 1]} : vector<8x16xf32> to vector<8x4xf32>
    %102 = arith.addf %100, %101 : vector<8x4xf32>
    %103 = vector.extract_strided_slice %95 {offsets = [0, 12], sizes = [8, 4], strides = [1, 1]} : vector<8x16xf32> to vector<8x4xf32>
    %104 = arith.addf %102, %103 : vector<8x4xf32>
    %105 = vector.extract_strided_slice %97 {offsets = [0, 0], sizes = [8, 4], strides = [1, 1]} : vector<8x16xf32> to vector<8x4xf32>
    %106 = vector.extract_strided_slice %97 {offsets = [0, 4], sizes = [8, 4], strides = [1, 1]} : vector<8x16xf32> to vector<8x4xf32>
    %107 = arith.addf %105, %106 : vector<8x4xf32>
    %108 = vector.extract_strided_slice %97 {offsets = [0, 8], sizes = [8, 4], strides = [1, 1]} : vector<8x16xf32> to vector<8x4xf32>
    %109 = arith.addf %107, %108 : vector<8x4xf32>
    %110 = vector.extract_strided_slice %97 {offsets = [0, 12], sizes = [8, 4], strides = [1, 1]} : vector<8x16xf32> to vector<8x4xf32>
    %111 = arith.addf %109, %110 : vector<8x4xf32>
    %112 = tpu.reciprocal %104 {approx = true} : vector<8x4xf32> -> vector<8x4xf32>
    %cst_42 = arith.constant 11.3137083 : f32
    %113 = vector.broadcast %cst_42 : f32 to vector<8x4xf32>
    %114 = arith.mulf %112, %113 : vector<8x4xf32>
    %115 = arith.mulf %111, %114 : vector<8x4xf32>
    %cst_43 = arith.constant dense<0.000000e+00> : vector<8xf32>
    %116 = vector.multi_reduction <add>, %115, %cst_43 [1] : vector<8x4xf32> to vector<8xf32>
    %117 = vector.shape_cast %116 : vector<8xf32> to vector<8x1xf32>
    %c0_44 = arith.constant 0 : index
    %c0_45 = arith.constant 0 : index
    %118 = vector.load %arg11[%c0_44, %c0_45] : memref<1x1xf32, #tpu.memory_space<vmem>>, vector<1x1xf32>
    %119 = vector.broadcast %118 : vector<1x1xf32> to vector<8x1xf32>
    %120 = arith.addf %117, %119 : vector<8x1xf32>
    %c0_46 = arith.constant 0 : index
    %c0_47 = arith.constant 0 : index
    %121 = vector.load %arg12[%c0_46, %c0_47] : memref<8x1xf32, #tpu.memory_space<vmem>>, vector<8x1xf32>
    tpu.vector_store %arg12[%c0_46, %c0_47], %120 {strides = array<i32>} : memref<8x1xf32, #tpu.memory_space<vmem>>, vector<8x1xf32>,
    return
  }
  func.func @transform_0(%arg0: i32) -> (i32, i32) {
    %c0_i32 = arith.constant 0 : i32
    %c0_i32_0 = arith.constant 0 : i32
    return %arg0, %c0_i32 : i32, i32
  }
  func.func @transform_1(%arg0: i32) -> (i32, i32) {
    %c0_i32 = arith.constant 0 : i32
    %c0_i32_0 = arith.constant 0 : i32
    return %arg0, %c0_i32 : i32, i32
  }
  func.func @transform_2(%arg0: i32) -> (i32, i32) {
    %c0_i32 = arith.constant 0 : i32
    %c0_i32_0 = arith.constant 0 : i32
    return %arg0, %c0_i32 : i32, i32
  }
  func.func @transform_3(%arg0: i32) -> (i32, i32) {
    %c0_i32 = arith.constant 0 : i32
    %c0_i32_0 = arith.constant 0 : i32
    return %arg0, %c0_i32 : i32, i32
  }
  func.func @transform_4(%arg0: i32) -> (i32, i32) {
    %c0_i32 = arith.constant 0 : i32
    %c0_i32_0 = arith.constant 0 : i32
    %c0_i32_1 = arith.constant 0 : i32
    return %c0_i32, %c0_i32_0 : i32, i32
  }
  func.func @transform_5(%arg0: i32) -> (i32, i32) {
    %c0_i32 = arith.constant 0 : i32
    %c0_i32_0 = arith.constant 0 : i32
    %c0_i32_1 = arith.constant 0 : i32
    return %c0_i32, %c0_i32_0 : i32, i32
  }
  func.func @transform_6(%arg0: i32) -> (i32, i32) {
    %c0_i32 = arith.constant 0 : i32
    %c0_i32_0 = arith.constant 0 : i32
    %c0_i32_1 = arith.constant 0 : i32
    return %c0_i32, %c0_i32_0 : i32, i32
  }
  func.func @transform_7(%arg0: i32) -> (i32, i32) {
    %c0_i32 = arith.constant 0 : i32
    %c0_i32_0 = arith.constant 0 : i32
    %c0_i32_1 = arith.constant 0 : i32
    return %c0_i32, %c0_i32_0 : i32, i32
  }
  func.func @transform_8(%arg0: i32) -> (i32, i32) {
    %c0_i32 = arith.constant 0 : i32
    %c0_i32_0 = arith.constant 0 : i32
    %c0_i32_1 = arith.constant 0 : i32
    return %c0_i32, %c0_i32_0 : i32, i32
  }
  func.func @transform_9(%arg0: i32) -> (i32, i32) {
    %c0_i32 = arith.constant 0 : i32
    %c0_i32_0 = arith.constant 0 : i32
    %c0_i32_1 = arith.constant 0 : i32
    return %c0_i32, %c0_i32_0 : i32, i32
  }
  func.func @transform_10(%arg0: i32) -> (i32, i32) {
    %c0_i32 = arith.constant 0 : i32
    %c0_i32_0 = arith.constant 0 : i32
    %c0_i32_1 = arith.constant 0 : i32
    return %c0_i32, %c0_i32_0 : i32, i32
  }
  func.func @transform_11(%arg0: i32) -> (i32, i32) {
    %c0_i32 = arith.constant 0 : i32
    %c0_i32_0 = arith.constant 0 : i32
    return %arg0, %c0_i32 : i32, i32
  }
}

</mosaic_0001>

<bundles_post_ra>
// kernel: tpu_custom_call.1
= control target key start
LH: loop header
LB: loop body
LE: loop exit
PB: predicated region body
PF: predicated region fallthrough
CT: control target
= control target key end

     0   :  { %vm68_vm0 = vcmask 1042432   ;;  %v5108_v1 = vmov 0.0   ;;  %vm64_vm1 = vcmask 23552   ;;  %vm5109_vm2 = vmmov 0   ;;  %s5113_s25 = smov 4   ;;  %s6614_s6 = inlined_call_operand.vmem [shape: f32[3,260], index: 6, kind: input, shape index: {}]   ;;  %s6615_s2 = inlined_call_operand.vmem [shape: f32[8,3], index: 2, kind: input, shape index: {}]   ;;  %s6616_s4 = inlined_call_operand.vmem [shape: f32[3,260], index: 4, kind: input, shape index: {}]   ;;  %s6617_s8 = inlined_call_operand.vmem [shape: bf16[2048,260], index: 8, kind: input, shape index: {}]   ;;  %s6618_s0 = inlined_call_operand.vmem [shape: f32[8,3], index: 0, kind: input, shape index: {}]   ;;  %s6619_s1 = inlined_call_operand.vmem [shape: f32[8,3], index: 1, kind: input, shape index: {}]   ;;  %s6620_s3 = inlined_call_operand.vmem [shape: f32[8,2048], index: 3, kind: input, shape index: {}]   ;;  %s6621_s7 = inlined_call_operand.vmem [shape: f32[1,260], index: 7, kind: input, shape index: {}]   ;;  %s6622_s5 = inlined_call_operand.vmem [shape: f32[1,260], index: 5, kind: input, shape index: {}]   ;;  %s6623_s9 = inlined_call_operand.vmem [shape: f32[1,260], index: 9, kind: input, shape index: {}]   ;;  %s6624_s10 = inlined_call_operand.<no memory space> [shape: f32[1,1], index: 10, kind: input, shape index: {}]   ;;  %s6625_s11 = inlined_call_operand.vmem [shape: f32[8,1], index: 11, kind: output, shape index: {}]  }
   0x1   :  { %v42_v0 = vld [vmem:[%s6614_s6] sm:$0x77]  ;;  %139 = vmatprep.mubr.f32.mxu0 %v5108_v1  ;;  %4537 = vmatprep.subr.mxu1 %v5108_v1  ;;  %v4595_v10 = vld [vmem:[%s6617_s8 + $0x31c] ss:$12 sps:$4 sm:$0xff]   ;;  %v4601_v14 = vld [vmem:[%s6617_s8 + $0x34c] ss:$12 sps:$4 sm:$0xff]  }
   0x2   :  { %v217_v2 = vld [vmem:[%s6616_s4] sm:$0x77]  ;;  %v63_v3 = vcombine.high %v42_v0, %v42_v0  ;;  %v4596_v13 = vld [vmem:[%s6617_s8 + $0x330] ss:$12 sps:$4 sm:$0xff]   ;;  %v4599_v15 = vld [vmem:[%s6617_s8 + $0x348] ss:$12 sps:$4 sm:$0xff]   ;;  %4539 = vmatprep.mubr.msk.f32.mxu1 %vm5109_vm2, %v5108_v1 }
   0x3   :  { %v238_v4 = vcombine.high %v217_v2, %v217_v2  ;;  %v5187_v5 = vld [vmem:[%s6615_s2] sm:$0xff]  ;;  %v539_v17 = vld [vmem:[%s6620_s3 + $0x28] sm:$0xff]  ;;  %v4608_v23 = vld [vmem:[%s6617_s8 + $0x390] ss:$12 sps:$4 sm:$0xff]   ;;  %vm3839_vm3 = vcmask 7168   ;;  %vm3841_vm4 = vcmask 15360  }
   0x4   :  { %3955 = vmatprep.subr.msk.mxu0 %vm68_vm0, %v63_v3  ;;  %v5199_v6 = vld [vmem:[%s6618_s0] sm:$0xff]  ;;  %v5243_v18 = vpack.c.bf16 %v539_v17, %v539_v17  ;;  %v4607_v20 = vld [vmem:[%s6617_s8 + $0x37c] ss:$12 sps:$4 sm:$0xff]   ;;  %v4613_v24 = vld [vmem:[%s6617_s8 + $0x3ac] ss:$12 sps:$4 sm:$0xff]   ;;  %vm3844_vm5 = vcmask 31744  }
   0x5   :  { %3956 = vmatpush1.msk.msra.mxu0 %vm68_vm0, %v42_v0  ;;  %v4592_v7 = vld [vmem:[%s6617_s8 + $0x304] ss:$12 sps:$4 sm:$0xff]   ;;  %v4590_v8 = vld [vmem:[%s6617_s8 + $0x300] ss:$12 sps:$4 sm:$0xff]   ;;  %v4611_v25 = vld [vmem:[%s6617_s8 + $0x3a8] ss:$12 sps:$4 sm:$0xff]  }
   0x6   :  { %3957 = vmatmul.mubr.msk.f32.vlgmr.msra.gmra.mrb[0].mxu0 %vm64_vm1, %v5187_v5  ;;  %3960 = vmatprep.subr.msk.mxu0 %vm68_vm0, %v238_v4  ;;  %v5215_v9 = vld [vmem:[%s6619_s1] sm:$0xff]  ;;  %v4619_v28 = vld [vmem:[%s6617_s8 + $0x3dc] ss:$12 sps:$4 sm:$0xff]   ;;  %v4625_v32 = vld [vmem:[%s6617_s8 + $0x40c] ss:$12 sps:$4 sm:$0xff]   ;;  %vm3846_vm6 = vcmask 39936  }
   0x7   :  { %3961 = vmatpush1.msk.msra.mxu0 %vm68_vm0, %v217_v2  ;;  %312 = vmatprep.mubr.f32.mxu0 %v5108_v1  ;;  %v4593_v11 = vld [vmem:[%s6617_s8 + $0x318] ss:$12 sps:$4 sm:$0xff]   ;;  %v4598_v12 = vld [vmem:[%s6617_s8 + $0x334] ss:$12 sps:$4 sm:$0xff]   ;;  %v4620_v31 = vld [vmem:[%s6617_s8 + $0x3f0] ss:$12 sps:$4 sm:$0xff]  }
   0x8   :  { %3965 = vmatprep.subr.msk.mxu0 %vm68_vm0, %v238_v4  ;;  %v4604_v16 = vld [vmem:[%s6617_s8 + $0x364] ss:$12 sps:$4 sm:$0xff]   ;;  %v4602_v19 = vld [vmem:[%s6617_s8 + $0x360] ss:$12 sps:$4 sm:$0xff]   ;;  %v4623_v33 = vld [vmem:[%s6617_s8 + $0x408] ss:$12 sps:$4 sm:$0xff]  }
   0x9   :  { %v4605_v21 = vld [vmem:[%s6617_s8 + $0x378] ss:$12 sps:$4 sm:$0xff]   ;;  %v4610_v22 = vld [vmem:[%s6617_s8 + $0x394] ss:$12 sps:$4 sm:$0xff]   ;;  %v4631_v36 = vld [vmem:[%s6617_s8 + $0x43c] ss:$12 sps:$4 sm:$0xff]  }
   0xa   :  { %3962 = vmatmul.mubr.msk.f32.vlgmr.msra.gmra.mrb[2].mxu0 %vm64_vm1, %v5199_v6  ;;  %v4616_v26 = vld [vmem:[%s6617_s8 + $0x3c4] ss:$12 sps:$4 sm:$0xff]   ;;  %v4614_v27 = vld [vmem:[%s6617_s8 + $0x3c0] ss:$12 sps:$4 sm:$0xff]   ;;  %v43_v39 = vld [vmem:[%s6614_s6 + $0x8] sm:$0x7] }
   0xb   :  { %3966 = vmatpush1.msk.msra.mxu0 %vm68_vm0, %v217_v2  ;;  %457 = vmatprep.mubr.f32.mxu0 %v5108_v1  ;;  %v4617_v29 = vld [vmem:[%s6617_s8 + $0x3d8] ss:$12 sps:$4 sm:$0xff]   ;;  %v4622_v30 = vld [vmem:[%s6617_s8 + $0x3f4] ss:$12 sps:$4 sm:$0xff]   ;;  %v4632_v40 = vld [vmem:[%s6617_s8 + $0x450] ss:$12 sps:$4 sm:$0xff]  }
   0xc   :  { %3225 = vmatprep.subr.bf16.mxu0 %v4592_v7  ;;  %v4628_v34 = vld [vmem:[%s6617_s8 + $0x424] ss:$12 sps:$4 sm:$0xff]   ;;  %v4626_v35 = vld [vmem:[%s6617_s8 + $0x420] ss:$12 sps:$4 sm:$0xff]   ;;  %4538 = vmatpush3.msk.msra.mxu1 %vm68_vm0, %v43_v39  ;;  %v218_v42 = vld [vmem:[%s6616_s4 + $0x8] sm:$0x7] }
   0xd   :  { %v4629_v37 = vld [vmem:[%s6617_s8 + $0x438] ss:$12 sps:$4 sm:$0xff]   ;;  %v4634_v38 = vld [vmem:[%s6617_s8 + $0x454] ss:$12 sps:$4 sm:$0xff]   ;;  %4540 = vmatmul.mubr.msk.f32.vlgmr.msra.gmra.mrb[0].mxu1 %vm64_vm1, %v5187_v5  ;;  %4542 = vmatprep.subr.mxu1 %v5108_v1  ;;  %v4643_v52 = vld [vmem:[%s6617_s8 + $0x49c] ss:$12 sps:$4 sm:$0xff]  }
   0xe   :  { %3967 = vmatmul.mubr.msk.f32.vlgmr.msra.gmra.mrb[4].mxu0 %vm64_vm1, %v5215_v9  ;;  %v4637_v41 = vld [vmem:[%s6617_s8 + $0x46c] ss:$12 sps:$4 sm:$0xff]   ;;  %v4635_v43 = vld [vmem:[%s6617_s8 + $0x468] ss:$12 sps:$4 sm:$0xff]   ;;  %4543 = vmatpush3.msk.msra.mxu1 %vm68_vm0, %v218_v42  ;;  %v4640_v44 = vld [vmem:[%s6617_s8 + $0x484] ss:$12 sps:$4 sm:$0xff]  }
   0xf   :  { %3226 = vmatpush1.bf16.msra.mxu0 %v4590_v8  ;;  %3257 = vmatprep.mubr.bf16.mxu0 %v5243_v18  ;;  %v538_v45 = vld [vmem:[%s6620_s3 + $0x20] sm:$0xff]  ;;  %v541_v46 = vld [vmem:[%s6620_s3 + $0x38] sm:$0xff]  ;;  %v4752_v61 = vld [vmem:[%s6617_s8 + $0x48] ss:$12 sps:$4 sm:$0xff]   ;;  %vm3848_vm7 = vcmask 48128   ;;  %vm3850_vm8 = vcmask 56320  }
  0x10   :  { %3227 = vmatprep.subr.bf16.mxu0 %v4595_v10  ;;  %4544 = vmatprep.mubr.msk.f32.mxu1 %vm5109_vm2, %v5108_v1  ;;  %v4734_v47 = vld [vmem:[%s6617_s8] ss:$12 sps:$4 sm:$0xff]   ;;  %v4736_v48 = vld [vmem:[%s6617_s8 + $0x4] ss:$12 sps:$4 sm:$0xff]   ;;  %v5351_v49 = vpack.c.bf16 %v538_v45, %v538_v45  ;;  %v5356_v51 = vpack.c.bf16 %v541_v46, %v541_v46  ;;  %v4742_v54 = vld [vmem:[%s6617_s8 + $0x1c] ss:$12 sps:$4 sm:$0xff]  }
  0x11   :  { %4547 = vmatprep.subr.mxu1 %v5108_v1  ;;  %4545 = vmatmul.mubr.msk.f32.vlgmr.msra.gmra.mrb[2].mxu1 %vm64_vm1, %v5199_v6  ;;  %v4638_v50 = vld [vmem:[%s6617_s8 + $0x480] ss:$12 sps:$4 sm:$0xff]   ;;  %v4740_v53 = vld [vmem:[%s6617_s8 + $0x18] ss:$12 sps:$4 sm:$0xff]   ;;  %v4746_v57 = vld [vmem:[%s6617_s8 + $0x30] ss:$12 sps:$4 sm:$0xff]  }
  0x12   :  { %4548 = vmatpush3.msk.msra.mxu1 %vm68_vm0, %v218_v42  ;;  %4549 = vmatprep.mubr.msk.f32.mxu1 %vm5109_vm2, %v5108_v1  ;;  %v4641_v55 = vld [vmem:[%s6617_s8 + $0x498] ss:$12 sps:$4 sm:$0xff]   ;;  %v4646_v56 = vld [vmem:[%s6617_s8 + $0x4b4] ss:$12 sps:$4 sm:$0xff]   ;;  %v4644_v59 = vld [vmem:[%s6617_s8 + $0x4b0] ss:$12 sps:$4 sm:$0xff]  }
  0x13   :  { %3228 = vmatpush1.bf16.msra.mxu0 %v4593_v11  ;;  %3143 = vmatprep.subr.bf16.mxu1 %v4736_v48  ;;  %v4748_v58 = vld [vmem:[%s6617_s8 + $0x34] ss:$12 sps:$4 sm:$0xff]   ;;  %v4649_v60 = vld [vmem:[%s6617_s8 + $0x4cc] ss:$12 sps:$4 sm:$0xff]   ;;  %v4652_v0 = vld [vmem:[%s6617_s8 + $0x4e4] ss:$12 sps:$4 sm:$0xff]  }
  0x14   :  { %3229 = vmatprep.subr.bf16.mxu0 %v4598_v12  ;;  %v4754_v62 = vld [vmem:[%s6617_s8 + $0x4c] ss:$12 sps:$4 sm:$0xff]   ;;  %v4647_v63 = vld [vmem:[%s6617_s8 + $0x4c8] ss:$12 sps:$4 sm:$0xff]   ;;  %v4760_v3 = vld [vmem:[%s6617_s8 + $0x64] ss:$12 sps:$4 sm:$0xff]  }
  0x15   :  { %4550 = vmatmul.mubr.msk.f32.vlgmr.msra.gmra.mrb[4].mxu1 %vm64_vm1, %v5215_v9  ;;  %v4650_v1 = vld [vmem:[%s6617_s8 + $0x4e0] ss:$12 sps:$4 sm:$0xff]   ;;  %v4655_v4 = vld [vmem:[%s6617_s8 + $0x4fc] ss:$12 sps:$4 sm:$0xff]   ;;  %v4653_v6 = vld [vmem:[%s6617_s8 + $0x4f8] ss:$12 sps:$4 sm:$0xff]  }
  0x16   :  { %3144 = vmatpush1.bf16.msra.mxu1 %v4734_v47  ;;  %v4758_v2 = vld [vmem:[%s6617_s8 + $0x60] ss:$12 sps:$4 sm:$0xff]   ;;  %v4766_v5 = vld [vmem:[%s6617_s8 + $0x7c] ss:$12 sps:$4 sm:$0xff]   ;;  %v4764_v7 = vld [vmem:[%s6617_s8 + $0x78] ss:$12 sps:$4 sm:$0xff]  }
  0x17   :  { %3230 = vmatpush1.bf16.msra.mxu0 %v4596_v13  ;;  %3145 = vmatprep.subr.bf16.mxu1 %v4742_v54  ;;  %v4658_v8 = vld [vmem:[%s6617_s8 + $0x514] ss:$12 sps:$4 sm:$0xff]   ;;  %v4656_v10 = vld [vmem:[%s6617_s8 + $0x510] ss:$12 sps:$4 sm:$0xff]   ;;  %v4661_v12 = vld [vmem:[%s6617_s8 + $0x52c] ss:$12 sps:$4 sm:$0xff]  }
  0x18   :  { %3231 = vmatprep.subr.bf16.mxu0 %v4601_v14  ;;  %v4772_v9 = vld [vmem:[%s6617_s8 + $0x94] ss:$12 sps:$4 sm:$0xff]   ;;  %v4770_v11 = vld [vmem:[%s6617_s8 + $0x90] ss:$12 sps:$4 sm:$0xff]   ;;  %v4685_v45 = vld [vmem:[%s6617_s8 + $0x5ec] ss:$12 sps:$4 sm:$0xff]  }
  0x19   :  { %v4776_v13 = vld [vmem:[%s6617_s8 + $0xa8] ss:$12 sps:$4 sm:$0xff]   ;;  %v4782_v17 = vld [vmem:[%s6617_s8 + $0xc0] ss:$12 sps:$4 sm:$0xff]   ;;  %v4818_v42 = vld [vmem:[%s6617_s8 + $0x150] ss:$12 sps:$4 sm:$0xff]  }
  0x1a   :  { %3146 = vmatpush1.bf16.msra.mxu1 %v4740_v53  ;;  %v4659_v14 = vld [vmem:[%s6617_s8 + $0x528] ss:$12 sps:$4 sm:$0xff]   ;;  %v4826_v47 = vld [vmem:[%s6617_s8 + $0x16c] ss:$12 sps:$4 sm:$0xff]   ;;  %vm3852_vm9 = vcmask 64512   ;;  %vm3854_vm10 = vcmask 72704  }
  0x1b   :  { %3232 = vmatpush1.bf16.msra.mxu0 %v4599_v15  ;;  %3147 = vmatprep.subr.bf16.mxu1 %v4748_v58  ;;  %v4778_v15 = vld [vmem:[%s6617_s8 + $0xac] ss:$12 sps:$4 sm:$0xff]   ;;  %v4814_v39 = vld [vmem:[%s6617_s8 + $0x13c] ss:$12 sps:$4 sm:$0xff]   ;;  %v534_v58 = vld [vmem:[%s6620_s3] sm:$0xff]  ;;  %vm3856_vm11 = vcmask 80896  }
  0x1c   :  { %3233 = vmatprep.subr.bf16.mxu0 %v4604_v16  ;;  %v4664_v16 = vld [vmem:[%s6617_s8 + $0x544] ss:$12 sps:$4 sm:$0xff]   ;;  %v4824_v46 = vld [vmem:[%s6617_s8 + $0x168] ss:$12 sps:$4 sm:$0xff]   ;;  %vm3858_vm12 = vcmask 89088   ;;  %vm3860_vm13 = vcmask 97280  }
  0x1d   :  { %v4683_v48 = vld [vmem:[%s6617_s8 + $0x5e8] ss:$12 sps:$4 sm:$0xff]   ;;  %vm3862_vm14 = vcmask 105472   ;;  %vm3864_vm15 = vcmask 113664   ;;  %vm3866_vm0 = vcmask 121856   ;;  %s5112_s2 = smov 12  }
  0x1e   :  { %3148 = vmatpush1.bf16.msra.mxu1 %v4746_v57  ;;  %v543_v53 = vld [vmem:[%s6620_s3 + $0x48] sm:$0xff]  ;;  %v4832_v57 = vld [vmem:[%s6617_s8 + $0x184] ss:$12 sps:$4 sm:$0xff]   ;;  %s5114_s6 = smov 8  }
  0x1f   :  { %3234 = vmatpush1.bf16.msra.mxu0 %v4602_v19  ;;  %3149 = vmatprep.subr.bf16.mxu1 %v4754_v62  ;;  %v4662_v19 = vld [vmem:[%s6617_s8 + $0x540] ss:$12 sps:$4 sm:$0xff]   ;;  %v5573_v62 = vpack.c.bf16 %v543_v53, %v543_v53  ;;  %v4725_v53 = vld [vmem:[%s6617_s8 + $0x738] ss:$12 sps:$4 sm:$0xff]  }
  0x20   :  { %3235 = vmatprep.subr.bf16.mxu0 %v4607_v20  ;;  %v4784_v20 = vld [vmem:[%s6617_s8 + $0xc4] ss:$12 sps:$4 sm:$0xff]   ;;  %v535_v54 = vld [vmem:[%s6620_s3 + $0x8] sm:$0xff] }
  0x22   :  { %3150 = vmatpush1.bf16.msra.mxu1 %v4752_v61  ;;  %v4686_v61 = vld [vmem:[%s6617_s8 + $0x600] ss:$12 sps:$4 sm:$0xff]  }
  0x23   :  { %3236 = vmatpush1.bf16.msra.mxu0 %v4605_v21  ;;  %3151 = vmatprep.subr.bf16.mxu1 %v4760_v3  ;;  %v4667_v21 = vld [vmem:[%s6617_s8 + $0x55c] ss:$12 sps:$4 sm:$0xff]   ;;  %v4694_v3 = vld [vmem:[%s6617_s8 + $0x634] ss:$12 sps:$4 sm:$0xff]  }
  0x24   :  { %3237 = vmatprep.subr.bf16.mxu0 %v4610_v22  ;;  %v4788_v22 = vld [vmem:[%s6617_s8 + $0xd8] ss:$12 sps:$4 sm:$0xff]  }
  0x26   :  { %3152 = vmatpush1.bf16.msra.mxu1 %v4758_v2  ;;  %v4689_v2 = vld [vmem:[%s6617_s8 + $0x618] ss:$12 sps:$4 sm:$0xff]  }
  0x27   :  { %3238 = vmatpush1.bf16.msra.mxu0 %v4608_v23  ;;  %3153 = vmatprep.subr.bf16.mxu1 %v4766_v5  ;;  %v4665_v23 = vld [vmem:[%s6617_s8 + $0x558] ss:$12 sps:$4 sm:$0xff]   ;;  %v4844_v5 = vld [vmem:[%s6617_s8 + $0x1b4] ss:$12 sps:$4 sm:$0xff]  }
  0x28   :  { %3239 = vmatprep.subr.bf16.mxu0 %v4613_v24  ;;  %v4790_v24 = vld [vmem:[%s6617_s8 + $0xdc] ss:$12 sps:$4 sm:$0xff]  }
  0x2a   :  { %3154 = vmatpush1.bf16.msra.mxu1 %v4764_v7  ;;  %v4697_v7 = vld [vmem:[%s6617_s8 + $0x64c] ss:$12 sps:$4 sm:$0xff]  }
  0x2b   :  { %3240 = vmatpush1.bf16.msra.mxu0 %v4611_v25  ;;  %3155 = vmatprep.subr.bf16.mxu1 %v4772_v9  ;;  %v4670_v25 = vld [vmem:[%s6617_s8 + $0x574] ss:$12 sps:$4 sm:$0xff]   ;;  %v4850_v9 = vld [vmem:[%s6617_s8 + $0x1cc] ss:$12 sps:$4 sm:$0xff]  }
  0x2c   :  { %3241 = vmatprep.subr.bf16.mxu0 %v4616_v26  ;;  %v4794_v26 = vld [vmem:[%s6617_s8 + $0xf0] ss:$12 sps:$4 sm:$0xff]  }
  0x2e   :  { %3156 = vmatpush1.bf16.msra.mxu1 %v4770_v11  ;;  %v4700_v11 = vld [vmem:[%s6617_s8 + $0x664] ss:$12 sps:$4 sm:$0xff]  }
  0x2f   :  { %3242 = vmatpush1.bf16.msra.mxu0 %v4614_v27  ;;  %3157 = vmatprep.subr.bf16.mxu1 %v4778_v15  ;;  %v4668_v27 = vld [vmem:[%s6617_s8 + $0x570] ss:$12 sps:$4 sm:$0xff]  }
  0x30   :  { %3243 = vmatprep.subr.bf16.mxu0 %v4619_v28  ;;  %v4796_v28 = vld [vmem:[%s6617_s8 + $0xf4] ss:$12 sps:$4 sm:$0xff]   ;;  %v4703_v15 = vld [vmem:[%s6617_s8 + $0x67c] ss:$12 sps:$4 sm:$0xff]  }
  0x32   :  { %3158 = vmatpush1.bf16.msra.mxu1 %v4776_v13  ;;  %v4856_v13 = vld [vmem:[%s6617_s8 + $0x1e4] ss:$12 sps:$4 sm:$0xff]  }
  0x33   :  { %3244 = vmatpush1.bf16.msra.mxu0 %v4617_v29  ;;  %3159 = vmatprep.subr.bf16.mxu1 %v4784_v20  ;;  %v4673_v29 = vld [vmem:[%s6617_s8 + $0x58c] ss:$12 sps:$4 sm:$0xff]   ;;  %v4706_v20 = vld [vmem:[%s6617_s8 + $0x694] ss:$12 sps:$4 sm:$0xff]  }
  0x34   :  { %3245 = vmatprep.subr.bf16.mxu0 %v4622_v30  ;;  %v4800_v30 = vld [vmem:[%s6617_s8 + $0x108] ss:$12 sps:$4 sm:$0xff]  }
  0x36   :  { %3160 = vmatpush1.bf16.msra.mxu1 %v4782_v17  ;;  %v4862_v17 = vld [vmem:[%s6617_s8 + $0x1fc] ss:$12 sps:$4 sm:$0xff]  }
  0x37   :  { %3246 = vmatpush1.bf16.msra.mxu0 %v4620_v31  ;;  %3161 = vmatprep.subr.bf16.mxu1 %v4790_v24  ;;  %v4802_v31 = vld [vmem:[%s6617_s8 + $0x10c] ss:$12 sps:$4 sm:$0xff]  }
  0x38   :  { %3247 = vmatprep.subr.bf16.mxu0 %v4625_v32  ;;  %v4671_v32 = vld [vmem:[%s6617_s8 + $0x588] ss:$12 sps:$4 sm:$0xff]   ;;  %v4709_v24 = vld [vmem:[%s6617_s8 + $0x6ac] ss:$12 sps:$4 sm:$0xff]  }
  0x3a   :  { %3162 = vmatpush1.bf16.msra.mxu1 %v4788_v22  ;;  %v4868_v22 = vld [vmem:[%s6617_s8 + $0x214] ss:$12 sps:$4 sm:$0xff]  }
  0x3b   :  { %3248 = vmatpush1.bf16.msra.mxu0 %v4623_v33  ;;  %3163 = vmatprep.subr.bf16.mxu1 %v4796_v28  ;;  %v4676_v33 = vld [vmem:[%s6617_s8 + $0x5a4] ss:$12 sps:$4 sm:$0xff]  }
  0x3c   :  { %3249 = vmatprep.subr.bf16.mxu0 %v4628_v34  ;;  %v4806_v34 = vld [vmem:[%s6617_s8 + $0x120] ss:$12 sps:$4 sm:$0xff]   ;;  %v4712_v28 = vld [vmem:[%s6617_s8 + $0x6c4] ss:$12 sps:$4 sm:$0xff]  }
  0x3e   :  { %3164 = vmatpush1.bf16.msra.mxu1 %v4794_v26  ;;  %v4874_v26 = vld [vmem:[%s6617_s8 + $0x22c] ss:$12 sps:$4 sm:$0xff]  }
  0x3f   :  { %3250 = vmatpush1.bf16.msra.mxu0 %v4626_v35  ;;  %3165 = vmatprep.subr.bf16.mxu1 %v4802_v31  ;;  %v4808_v35 = vld [vmem:[%s6617_s8 + $0x124] ss:$12 sps:$4 sm:$0xff]   ;;  %v4710_v31 = vld [vmem:[%s6617_s8 + $0x6c0] ss:$12 sps:$4 sm:$0xff]  }
  0x40   :  { %3251 = vmatprep.subr.bf16.mxu0 %v4631_v36  ;;  %v4674_v36 = vld [vmem:[%s6617_s8 + $0x5a0] ss:$12 sps:$4 sm:$0xff]  }
  0x42   :  { %3166 = vmatpush1.bf16.msra.mxu1 %v4800_v30  ;;  %v4880_v30 = vld [vmem:[%s6617_s8 + $0x244] ss:$12 sps:$4 sm:$0xff]  }
  0x43   :  { %3252 = vmatpush1.bf16.msra.mxu0 %v4629_v37  ;;  %3167 = vmatprep.subr.bf16.mxu1 %v4808_v35  ;;  %v4679_v37 = vld [vmem:[%s6617_s8 + $0x5bc] ss:$12 sps:$4 sm:$0xff]   ;;  %v4713_v35 = vld [vmem:[%s6617_s8 + $0x6d8] ss:$12 sps:$4 sm:$0xff]  }
  0x44   :  { %3253 = vmatprep.subr.bf16.mxu0 %v4634_v38  ;;  %v4812_v38 = vld [vmem:[%s6617_s8 + $0x138] ss:$12 sps:$4 sm:$0xff]  }
  0x46   :  { %3168 = vmatpush1.bf16.msra.mxu1 %v4806_v34  ;;  %v4886_v34 = vld [vmem:[%s6617_s8 + $0x25c] ss:$12 sps:$4 sm:$0xff]  }
  0x47   :  { %3254 = vmatpush1.bf16.msra.mxu0 %v4632_v40  ;;  %3169 = vmatprep.subr.bf16.mxu1 %v4814_v39  ;;  %v4677_v40 = vld [vmem:[%s6617_s8 + $0x5b8] ss:$12 sps:$4 sm:$0xff]   ;;  %v4716_v39 = vld [vmem:[%s6617_s8 + $0x6f0] ss:$12 sps:$4 sm:$0xff]  }
  0x48   :  { %3255 = vmatprep.subr.bf16.mxu0 %v4637_v41  ;;  %v4682_v41 = vld [vmem:[%s6617_s8 + $0x5d4] ss:$12 sps:$4 sm:$0xff]  }
  0x4a   :  { %3170 = vmatpush1.bf16.msra.mxu1 %v4812_v38  ;;  %v4892_v38 = vld [vmem:[%s6617_s8 + $0x274] ss:$12 sps:$4 sm:$0xff]  }
  0x4b   :  { %3256 = vmatpush1.bf16.msra.mxu0 %v4635_v43  ;;  %v4820_v43 = vld [vmem:[%s6617_s8 + $0x154] ss:$12 sps:$4 sm:$0xff]  }
  0x4c   :  { %3266 = vmatprep.subr.bf16.mxu0 %v4640_v44  ;;  %3171 = vmatprep.subr.bf16.mxu1 %v4820_v43  ;;  %v4680_v44 = vld [vmem:[%s6617_s8 + $0x5d0] ss:$12 sps:$4 sm:$0xff]   ;;  %v4719_v43 = vld [vmem:[%s6617_s8 + $0x708] ss:$12 sps:$4 sm:$0xff]  }
  0x4e   :  { %3258 = vmatmul.mubr.bf16.vlgmr.msra.gmra.mrb[8].mxu0 %v5351_v49  ;;  %3172 = vmatpush1.bf16.msra.mxu1 %v4818_v42  ;;  %v4898_v42 = vld [vmem:[%s6617_s8 + $0x28c] ss:$12 sps:$4 sm:$0xff]  }
  0x4f   :  { %3267 = vmatpush1.bf16.msra.mxu0 %v4638_v50  ;;  %3298 = vmatprep.mubr.bf16.mxu0 %v5356_v51  ;;  %v4688_v50 = vld [vmem:[%s6617_s8 + $0x604] ss:$12 sps:$4 sm:$0xff]  }
  0x50   :  { %3268 = vmatprep.subr.bf16.mxu0 %v4643_v52  ;;  %3173 = vmatprep.subr.bf16.mxu1 %v4826_v47  ;;  %v540_v52 = vld [vmem:[%s6620_s3 + $0x30] sm:$0xff]  ;;  %v4722_v47 = vld [vmem:[%s6617_s8 + $0x720] ss:$12 sps:$4 sm:$0xff]  }
  0x52   :  { %3174 = vmatpush1.bf16.msra.mxu1 %v4824_v46  ;;  %v4904_v46 = vld [vmem:[%s6617_s8 + $0x2a4] ss:$12 sps:$4 sm:$0xff]  }
  0x53   :  { %3269 = vmatpush1.bf16.msra.mxu0 %v4641_v55  ;;  %v5554_v55 = vpack.c.bf16 %v535_v54, %v535_v54  ;;  %3184 = vmatprep.subr.bf16.mxu1 %v4832_v57  ;;  %v4730_v54 = vld [vmem:[%s6617_s8 + $0x754] ss:$12 sps:$4 sm:$0xff]  }
  0x54   :  { %3270 = vmatprep.subr.bf16.mxu0 %v4646_v56  ;;  %v4830_v56 = vld [vmem:[%s6617_s8 + $0x180] ss:$12 sps:$4 sm:$0xff]  }
  0x55   :  { %3175 = vmatprep.mubr.bf16.mxu1 %v5554_v55  ;;  %v4916_v57 = vld [vmem:[%s6617_s8 + $0x2d4] ss:$12 sps:$4 sm:$0xff]  }
  0x57   :  { %3271 = vmatpush1.bf16.msra.mxu0 %v4644_v59  ;;  %v5565_v59 = vpack.c.bf16 %v534_v58, %v534_v58  ;;  %v4728_v58 = vld [vmem:[%s6617_s8 + $0x750] ss:$12 sps:$4 sm:$0xff]  }
  0x58   :  { %3272 = vmatprep.subr.bf16.mxu0 %v4649_v60  ;;  %v5567_v60 = vpack.c.bf16 %v540_v52, %v540_v52  ;;  %v4910_v52 = vld [vmem:[%s6617_s8 + $0x2bc] ss:$12 sps:$4 sm:$0xff]  }
  0x59   :  { %3176 = vmatmul.mubr.bf16.vlgmr.msra.gmra.mrb[8].mxu1 %v5565_v59 }
  0x5a   :  { %3185 = vmatpush1.bf16.msra.mxu1 %v4830_v56  ;;  %v4914_v56 = vld [vmem:[%s6617_s8 + $0x2d0] ss:$12 sps:$4 sm:$0xff]  }
  0x5b   :  { %3273 = vmatpush1.bf16.msra.mxu0 %v4647_v63  ;;  %v4691_v63 = vld [vmem:[%s6617_s8 + $0x61c] ss:$12 sps:$4 sm:$0xff]  }
  0x5c   :  { %3274 = vmatprep.subr.bf16.mxu0 %v4652_v0  ;;  %v4836_v0 = vld [vmem:[%s6617_s8 + $0x198] ss:$12 sps:$4 sm:$0xff]  }
  0x5f   :  { %3275 = vmatpush1.bf16.msra.mxu0 %v4650_v1  ;;  %v4838_v1 = vld [vmem:[%s6617_s8 + $0x19c] ss:$12 sps:$4 sm:$0xff]  }
  0x60   :  { %3276 = vmatprep.subr.bf16.mxu0 %v4655_v4  ;;  %3186 = vmatprep.subr.bf16.mxu1 %v4838_v1  ;;  %v4842_v4 = vld [vmem:[%s6617_s8 + $0x1b0] ss:$12 sps:$4 sm:$0xff]   ;;  %v4731_v1 = vld [vmem:[%s6617_s8 + $0x768] ss:$12 sps:$4 sm:$0xff]  }
  0x61   :  { %3187 = vmatpush1.bf16.msra.mxu1 %v4836_v0  ;;  %v4922_v0 = vld [vmem:[%s6617_s8 + $0x2ec] ss:$12 sps:$4 sm:$0xff]  }
  0x62   :  { %3188 = vmatprep.subr.bf16.mxu1 %v4844_v5  ;;  %v46_v5 = vlaneseq }
  0x63   :  { %3277 = vmatpush1.bf16.msra.mxu0 %v4653_v6  ;;  %v4692_v6 = vld [vmem:[%s6617_s8 + $0x630] ss:$12 sps:$4 sm:$0xff]  }
  0x64   :  { %3278 = vmatprep.subr.bf16.mxu0 %v4658_v8  ;;  %v4848_v8 = vld [vmem:[%s6617_s8 + $0x1c8] ss:$12 sps:$4 sm:$0xff]  }
  0x65   :  { %3189 = vmatpush1.bf16.msra.mxu1 %v4842_v4  ;;  %v542_v4 = vld [vmem:[%s6620_s3 + $0x40] sm:$0xff] }
  0x66   :  { %3190 = vmatprep.subr.bf16.mxu1 %v4850_v9 }
  0x67   :  { %3279 = vmatpush1.bf16.msra.mxu0 %v4656_v10  ;;  %v4695_v10 = vld [vmem:[%s6617_s8 + $0x648] ss:$12 sps:$4 sm:$0xff]  }
  0x68   :  { %3280 = vmatprep.subr.bf16.mxu0 %v4661_v12  ;;  %v4854_v12 = vld [vmem:[%s6617_s8 + $0x1e0] ss:$12 sps:$4 sm:$0xff]  }
  0x69   :  { %3191 = vmatpush1.bf16.msra.mxu1 %v4848_v8  ;;  %v536_v8 = vld [vmem:[%s6620_s3 + $0x10] sm:$0xff] }
  0x6a   :  { %3192 = vmatprep.subr.bf16.mxu1 %v4856_v13  ;;  %v5775_v9 = vpack.c.bf16 %v536_v8, %v536_v8  ;;  %v4959_v8 = vld [vmem:[%s6617_s8 + $0x110] ss:$12 sps:$4 sm:$0xff]  }
  0x6b   :  { %3281 = vmatpush1.bf16.msra.mxu0 %v4659_v14  ;;  %v4698_v14 = vld [vmem:[%s6617_s8 + $0x660] ss:$12 sps:$4 sm:$0xff]  }
  0x6c   :  { %3282 = vmatprep.subr.bf16.mxu0 %v4664_v16  ;;  %v4860_v16 = vld [vmem:[%s6617_s8 + $0x1f8] ss:$12 sps:$4 sm:$0xff]  }
  0x6d   :  { %3193 = vmatpush1.bf16.msra.mxu1 %v4854_v12  ;;  %v5783_v12 = vshrl.u32 %v46_v5, 7  ;;  %v4793_v5 = vld [vmem:[%s6617_s8 + $0x85c] ss:$12 sps:$4 sm:$0xff]  }
  0x6e   :  { %3194 = vmatprep.subr.bf16.mxu1 %v4862_v17 }
  0x6f   :  { %3283 = vmatpush1.bf16.msra.mxu0 %v4662_v19  ;;  %v4701_v19 = vld [vmem:[%s6617_s8 + $0x678] ss:$12 sps:$4 sm:$0xff]   ;;  %v5800_v17 = vsub.s32 0, %v5783_v12 }
  0x70   :  { %3284 = vmatprep.subr.bf16.mxu0 %v4667_v21  ;;  %v4866_v21 = vld [vmem:[%s6617_s8 + $0x210] ss:$12 sps:$4 sm:$0xff]  }
  0x71   :  { %3195 = vmatpush1.bf16.msra.mxu1 %v4860_v16  ;;  %v4751_v16 = vld [vmem:[%s6617_s8 + $0x7b4] ss:$12 sps:$4 sm:$0xff]  }
  0x72   :  { %3196 = vmatprep.subr.bf16.mxu1 %v4868_v22  ;;  %v4755_v22 = vld [vmem:[%s6617_s8 + $0x7c8] ss:$12 sps:$4 sm:$0xff]  }
  0x73   :  { %3285 = vmatpush1.bf16.msra.mxu0 %v4665_v23  ;;  %v4704_v23 = vld [vmem:[%s6617_s8 + $0x690] ss:$12 sps:$4 sm:$0xff]  }
  0x74   :  { %3286 = vmatprep.subr.bf16.mxu0 %v4670_v25  ;;  %v4872_v25 = vld [vmem:[%s6617_s8 + $0x228] ss:$12 sps:$4 sm:$0xff]  }
  0x75   :  { %3197 = vmatpush1.bf16.msra.mxu1 %v4866_v21  ;;  %v5813_v21 = vsub.s32 1, %v5783_v12 }
  0x76   :  { %3198 = vmatprep.subr.bf16.mxu1 %v4874_v26  ;;  %v4763_v26 = vld [vmem:[%s6617_s8 + $0x7e4] ss:$12 sps:$4 sm:$0xff]  }
  0x77   :  { %3287 = vmatpush1.bf16.msra.mxu0 %v4668_v27  ;;  %v4707_v27 = vld [vmem:[%s6617_s8 + $0x6a8] ss:$12 sps:$4 sm:$0xff]  }
  0x78   :  { %3288 = vmatprep.subr.bf16.mxu0 %v4673_v29  ;;  %v4878_v29 = vld [vmem:[%s6617_s8 + $0x240] ss:$12 sps:$4 sm:$0xff]  }
  0x79   :  { %3199 = vmatpush1.bf16.msra.mxu1 %v4872_v25  ;;  %v219_v25 = vld [vmem:[%s6622_s5] sm:$0x7] }
  0x7a   :  { %3200 = vmatprep.subr.bf16.mxu1 %v4880_v30  ;;  %v224_v30 = vrot.slane %v219_v25, %v5800_v17 }
  0x7b   :  { %3289 = vmatpush1.bf16.msra.mxu0 %v4671_v32  ;;  %v4715_v32 = vld [vmem:[%s6617_s8 + $0x6dc] ss:$12 sps:$4 sm:$0xff]  }
  0x7c   :  { %3290 = vmatprep.subr.bf16.mxu0 %v4676_v33  ;;  %v4884_v33 = vld [vmem:[%s6617_s8 + $0x258] ss:$12 sps:$4 sm:$0xff]  }
  0x7d   :  { %3201 = vmatpush1.bf16.msra.mxu1 %v4878_v29 }
  0x7e   :  { %3202 = vmatprep.subr.bf16.mxu1 %v4886_v34  ;;  %v4769_v34 = vld [vmem:[%s6617_s8 + $0x7fc] ss:$12 sps:$4 sm:$0xff]  }
  0x7f   :  { %3291 = vmatpush1.bf16.msra.mxu0 %v4674_v36  ;;  %v4718_v36 = vld [vmem:[%s6617_s8 + $0x6f4] ss:$12 sps:$4 sm:$0xff]  }
  0x80   :  { %3292 = vmatprep.subr.bf16.mxu0 %v4679_v37  ;;  %v4890_v37 = vld [vmem:[%s6617_s8 + $0x270] ss:$12 sps:$4 sm:$0xff]  }
  0x81   :  { %3203 = vmatpush1.bf16.msra.mxu1 %v4884_v33  ;;  %v228_v33 = vrot.slane %v219_v25, %v5813_v21  ;;  %v4970_v25 = vld [vmem:[%s6617_s8 + $0x80] ss:$12 sps:$4 sm:$0xff]  }
  0x82   :  { %3204 = vmatprep.subr.bf16.mxu1 %v4892_v38 }
  0x83   :  { %3293 = vmatpush1.bf16.msra.mxu0 %v4677_v40  ;;  %v4721_v40 = vld [vmem:[%s6617_s8 + $0x70c] ss:$12 sps:$4 sm:$0xff]  }
  0x84   :  { %3294 = vmatprep.subr.bf16.mxu0 %v4682_v41  ;;  %v4896_v41 = vld [vmem:[%s6617_s8 + $0x288] ss:$12 sps:$4 sm:$0xff]  }
  0x85   :  { %3205 = vmatpush1.bf16.msra.mxu1 %v4890_v37 }
  0x86   :  { %3206 = vmatprep.subr.bf16.mxu1 %v4898_v42 }
  0x87   :  { %3295 = vmatpush1.bf16.msra.mxu0 %v4680_v44  ;;  %v4724_v44 = vld [vmem:[%s6617_s8 + $0x724] ss:$12 sps:$4 sm:$0xff]  }
  0x88   :  { %3296 = vmatprep.subr.bf16.mxu0 %v4685_v45  ;;  %v4902_v45 = vld [vmem:[%s6617_s8 + $0x2a0] ss:$12 sps:$4 sm:$0xff]  }
  0x89   :  { %3207 = vmatpush1.bf16.msra.mxu1 %v4896_v41  ;;  %v4775_v41 = vld [vmem:[%s6617_s8 + $0x814] ss:$12 sps:$4 sm:$0xff]  }
  0x8a   :  { %3208 = vmatprep.subr.bf16.mxu1 %v4904_v46 }
  0x8b   :  { %3297 = vmatpush1.bf16.msra.mxu0 %v4683_v48  ;;  %v4727_v48 = vld [vmem:[%s6617_s8 + $0x73c] ss:$12 sps:$4 sm:$0xff]  }
  0x8c   :  { %3307 = vmatprep.subr.bf16.mxu0 %v4688_v50  ;;  %v4908_v50 = vld [vmem:[%s6617_s8 + $0x2b8] ss:$12 sps:$4 sm:$0xff]  }
  0x8d   :  { %3209 = vmatpush1.bf16.msra.mxu1 %v4902_v45  ;;  %v4944_v45 = vld [vmem:[%s6617_s8 + $0xc8] ss:$12 sps:$4 sm:$0xff]  }
  0x8e   :  { %3299 = vmatmul.mubr.bf16.vlgmr.msra.gmra.mrb[8].mxu0 %v5567_v60  ;;  %3210 = vmatprep.subr.bf16.mxu1 %v4910_v52  ;;  %v4781_v52 = vld [vmem:[%s6617_s8 + $0x82c] ss:$12 sps:$4 sm:$0xff]  }
  0x8f   :  { %3308 = vmatpush1.bf16.msra.mxu0 %v4686_v61  ;;  %3339 = vmatprep.mubr.bf16.mxu0 %v5573_v62  ;;  %v4733_v61 = vld [vmem:[%s6617_s8 + $0x76c] ss:$12 sps:$4 sm:$0xff]  }
  0x90   :  { %3309 = vmatprep.subr.bf16.mxu0 %v4691_v63  ;;  %v4920_v63 = vld [vmem:[%s6617_s8 + $0x2e8] ss:$12 sps:$4 sm:$0xff]  }
  0x91   :  { %3211 = vmatpush1.bf16.msra.mxu1 %v4908_v50  ;;  %v4773_v50 = vld [vmem:[%s6617_s8 + $0x810] ss:$12 sps:$4 sm:$0xff]  }
  0x92   :  { %3212 = vmatprep.subr.bf16.mxu1 %v4916_v57 }
  0x93   :  { %3310 = vmatpush1.bf16.msra.mxu0 %v4689_v2  ;;  %v4739_v2 = vld [vmem:[%s6617_s8 + $0x784] ss:$12 sps:$4 sm:$0xff]  }
  0x94   :  { %3311 = vmatprep.subr.bf16.mxu0 %v4694_v3  ;;  %v537_v3 = vld [vmem:[%s6620_s3 + $0x18] sm:$0xff] }
  0x95   :  { %3213 = vmatpush1.bf16.msra.mxu1 %v4914_v56  ;;  %v4949_v56 = vld [vmem:[%s6617_s8 + $0xe0] ss:$12 sps:$4 sm:$0xff]  }
  0x96   :  { %3214 = vmatprep.subr.bf16.mxu1 %v4922_v0 }
  0x97   :  { %3312 = vmatpush1.bf16.msra.mxu0 %v4692_v6  ;;  %v545_v6 = vld [vmem:[%s6620_s3 + $0x58] sm:$0xff] }
  0x98   :  { %3313 = vmatprep.subr.bf16.mxu0 %v4697_v7  ;;  %v5770_v7 = vpack.c.bf16 %v537_v3, %v537_v3  ;;  %v5785_v13 = vpack.c.bf16 %v545_v6, %v545_v6  ;;  %v4791_v6 = vld [vmem:[%s6617_s8 + $0x858] ss:$12 sps:$4 sm:$0xff]  }
  0x99   :  { %3215 = vmatpush1.bf16.msra.mxu1 %v4920_v63  ;;  %v4787_v63 = vld [vmem:[%s6617_s8 + $0x844] ss:$12 sps:$4 sm:$0xff]  }
  0x9a   :  { %3216 = vmatprep.mubr.bf16.mxu1 %v5770_v7  ;;  %4361 = vmatprep.subr.bf16.mxu1 %v4944_v45  ;;  %v4835_v45 = vld [vmem:[%s6617_s8 + $0x904] ss:$12 sps:$4 sm:$0xff]  }
  0x9b   :  { %3314 = vmatpush1.bf16.msra.mxu0 %v4695_v10  ;;  %v5778_v10 = vpack.c.bf16 %v542_v4, %v542_v4  ;;  %v4955_v4 = vld [vmem:[%s6617_s8 + $0x38] ss:$12 sps:$4 sm:$0xff]  }
  0x9c   :  { %3315 = vmatprep.subr.bf16.mxu0 %v4700_v11  ;;  %v4737_v11 = vld [vmem:[%s6617_s8 + $0x780] ss:$12 sps:$4 sm:$0xff]   ;;  %3217 = vmatmul.mubr.bf16.vlgmr.msra.gmra.mrb[8].mxu1 %v5775_v9 }
  0x9d   :  { %3503 = vmatprep.mubr.bf16.mxu1 %v5554_v55  ;;  %v4749_v55 = vld [vmem:[%s6617_s8 + $0x7b0] ss:$12 sps:$4 sm:$0xff]  }
  0x9f   :  { %3316 = vmatpush1.bf16.msra.mxu0 %v4698_v14  ;;  %v4745_v14 = vld [vmem:[%s6617_s8 + $0x79c] ss:$12 sps:$4 sm:$0xff]  }
  0xa0   :  { %3317 = vmatprep.subr.bf16.mxu0 %v4703_v15  ;;  %v4743_v15 = vld [vmem:[%s6617_s8 + $0x798] ss:$12 sps:$4 sm:$0xff]  }
  0xa3   :  { %3318 = vmatpush1.bf16.msra.mxu0 %v4701_v19  ;;  %v44_v19 = vld [vmem:[%s6621_s7] sm:$0x7] }
  0xa4   :  { %3319 = vmatprep.subr.bf16.mxu0 %v4706_v20  ;;  %v4757_v20 = vld [vmem:[%s6617_s8 + $0x7cc] ss:$12 sps:$4 sm:$0xff]  }
  0xa7   :  { %3320 = vmatpush1.bf16.msra.mxu0 %v4704_v23  ;;  %v49_v23 = vrot.slane %v44_v19, %v5800_v17 }
  0xa8   :  { %3321 = vmatprep.subr.bf16.mxu0 %v4709_v24  ;;  %v53_v24 = vrot.slane %v44_v19, %v5813_v21  ;;  %v4965_v19 = vld [vmem:[%s6617_s8 + $0x68] ss:$12 sps:$4 sm:$0xff]  }
  0xab   :  { %3322 = vmatpush1.bf16.msra.mxu0 %v4707_v27 }
  0xac   :  { %3323 = vmatprep.subr.bf16.mxu0 %v4712_v28 }
  0xaf   :  { %3324 = vmatpush1.bf16.msra.mxu0 %v4710_v31 }
  0xb0   :  { %3325 = vmatprep.subr.bf16.mxu0 %v4715_v32  ;;  %v4761_v32 = vld [vmem:[%s6617_s8 + $0x7e0] ss:$12 sps:$4 sm:$0xff]  }
  0xb3   :  { %3326 = vmatpush1.bf16.msra.mxu0 %v4713_v35 }
  0xb4   :  { %3327 = vmatprep.subr.bf16.mxu0 %v4718_v36 }
  0xb7   :  { %3328 = vmatpush1.bf16.msra.mxu0 %v4716_v39 }
  0xb8   :  { %3329 = vmatprep.subr.bf16.mxu0 %v4721_v40  ;;  %v4767_v40 = vld [vmem:[%s6617_s8 + $0x7f8] ss:$12 sps:$4 sm:$0xff]  }
  0xbb   :  { %3330 = vmatpush1.bf16.msra.mxu0 %v4719_v43 }
  0xbc   :  { %3331 = vmatprep.subr.bf16.mxu0 %v4724_v44 }
  0xbf   :  { %3332 = vmatpush1.bf16.msra.mxu0 %v4722_v47 }
  0xc0   :  { %3333 = vmatprep.subr.bf16.mxu0 %v4727_v48  ;;  %v4945_v48 = vld [vmem:[%s6617_s8 + $0x8] ss:$12 sps:$4 sm:$0xff]  }
  0xc1   :  { %4362 = vmatpush3.bf16.msra.mxu1 %v4945_v48  ;;  %v547_v48 = vld [vmem:[%s6620_s3 + $0x68] sm:$0xff] }
  0xc2   :  { %4363 = vmatprep.subr.bf16.mxu1 %v4949_v56  ;;  %v4841_v56 = vld [vmem:[%s6617_s8 + $0x91c] ss:$12 sps:$4 sm:$0xff]  }
  0xc3   :  { %3334 = vmatpush1.bf16.msra.mxu0 %v4725_v53 }
  0xc4   :  { %3335 = vmatprep.subr.bf16.mxu0 %v4730_v54 }
  0xc7   :  { %3336 = vmatpush1.bf16.msra.mxu0 %v4728_v58  ;;  %v4950_v58 = vld [vmem:[%s6617_s8 + $0x20] ss:$12 sps:$4 sm:$0xff]  }
  0xc8   :  { %3337 = vmatprep.subr.bf16.mxu0 %v4733_v61  ;;  %v4779_v61 = vld [vmem:[%s6617_s8 + $0x828] ss:$12 sps:$4 sm:$0xff]   ;;  %4364 = vmatpush3.bf16.msra.mxu1 %v4950_v58  ;;  %v4996_v58 = vld [vmem:[%s6617_s8 + $0x290] ss:$12 sps:$4 sm:$0xff]  }
  0xcb   :  { %3338 = vmatpush1.bf16.msra.mxu0 %v4731_v1  ;;  %v4785_v1 = vld [vmem:[%s6617_s8 + $0x840] ss:$12 sps:$4 sm:$0xff]  }
  0xcc   :  { %3348 = vmatprep.subr.bf16.mxu0 %v4739_v2  ;;  %v4954_v2 = vld [vmem:[%s6617_s8 + $0xf8] ss:$12 sps:$4 sm:$0xff]  }
  0xcd   :  { %4365 = vmatprep.subr.bf16.mxu1 %v4954_v2  ;;  %v4999_v2 = vld [vmem:[%s6617_s8 + $0x1e8] ss:$12 sps:$4 sm:$0xff]  }
  0xce   :  { %3340 = vmatmul.mubr.bf16.vlgmr.msra.gmra.mrb[8].mxu0 %v5778_v10  ;;  %4366 = vmatpush3.bf16.msra.mxu1 %v4955_v4  ;;  %v5000_v4 = vld [vmem:[%s6617_s8 + $0x2c0] ss:$12 sps:$4 sm:$0xff]  }
  0xcf   :  { %3349 = vmatpush1.bf16.msra.mxu0 %v4737_v11  ;;  %3380 = vmatprep.mubr.bf16.mxu0 %v5785_v13 }
  0xd0   :  { %3350 = vmatprep.subr.bf16.mxu0 %v4745_v14  ;;  %v4960_v14 = vld [vmem:[%s6617_s8 + $0x50] ss:$12 sps:$4 sm:$0xff]   ;;  %4367 = vmatprep.subr.bf16.mxu1 %v4959_v8  ;;  %v4851_v8 = vld [vmem:[%s6617_s8 + $0x948] ss:$12 sps:$4 sm:$0xff]  }
  0xd2   :  { %4368 = vmatpush3.bf16.msra.mxu1 %v4960_v14  ;;  %v4859_v14 = vld [vmem:[%s6617_s8 + $0x964] ss:$12 sps:$4 sm:$0xff]  }
  0xd3   :  { %3351 = vmatpush1.bf16.msra.mxu0 %v4743_v15  ;;  %v4799_v15 = vld [vmem:[%s6617_s8 + $0x874] ss:$12 sps:$4 sm:$0xff]  }
  0xd4   :  { %3352 = vmatprep.subr.bf16.mxu0 %v4751_v16  ;;  %v4964_v16 = vld [vmem:[%s6617_s8 + $0x128] ss:$12 sps:$4 sm:$0xff]  }
  0xd5   :  { %4369 = vmatprep.subr.bf16.mxu1 %v4964_v16  ;;  %v5003_v16 = vld [vmem:[%s6617_s8 + $0x218] ss:$12 sps:$4 sm:$0xff]  }
  0xd6   :  { %4370 = vmatpush3.bf16.msra.mxu1 %v4965_v19  ;;  %v4857_v19 = vld [vmem:[%s6617_s8 + $0x960] ss:$12 sps:$4 sm:$0xff]  }
  0xd7   :  { %3353 = vmatpush1.bf16.msra.mxu0 %v4749_v55 }
  0xd8   :  { %3354 = vmatprep.subr.bf16.mxu0 %v4757_v20  ;;  %v4797_v20 = vld [vmem:[%s6617_s8 + $0x870] ss:$12 sps:$4 sm:$0xff]  }
  0xd9   :  { %v141_v27 = vpop.f32.mrb[0].mxu0 }
  0xda   :  { %v5826_v28 = vadd.f32 %v141_v27, %v49_v23  ;;  %v143_v29 = vpop.f32.mrb[1].mxu0  ;;  %v4803_v23 = vld [vmem:[%s6617_s8 + $0x888] ss:$12 sps:$4 sm:$0xff]   ;;  %v4809_v27 = vld [vmem:[%s6617_s8 + $0x8a0] ss:$12 sps:$4 sm:$0xff]  }
  0xdb   :  { %v5829_v31 = vadd.f32 %v143_v29, %v53_v24  ;;  %3355 = vmatpush1.bf16.msra.mxu0 %v4755_v22  ;;  %v4805_v22 = vld [vmem:[%s6617_s8 + $0x88c] ss:$12 sps:$4 sm:$0xff]  }
  0xdc   :  { %3356 = vmatprep.subr.bf16.mxu0 %v4763_v26  ;;  %v4969_v24 = vld [vmem:[%s6617_s8 + $0x140] ss:$12 sps:$4 sm:$0xff]   ;;  %v4811_v26 = vld [vmem:[%s6617_s8 + $0x8a4] ss:$12 sps:$4 sm:$0xff]  }
  0xdd   :  { %v314_v35 = vpop.f32.mrb[2].mxu0  ;;  %v3791_v36 = vmul.f32 %v5829_v31, %v5826_v28  ;;  %4371 = vmatprep.subr.bf16.mxu1 %v4969_v24  ;;  %v4974_v29 = vld [vmem:[%s6617_s8 + $0x158] ss:$12 sps:$4 sm:$0xff]  }
  0xde   :  { %v5840_v37 = vadd.f32 %v314_v35, %v224_v30  ;;  %v316_v38 = vpop.f32.mrb[3].mxu0  ;;  %4372 = vmatpush3.bf16.msra.mxu1 %v4970_v25  ;;  %v4980_v35 = vld [vmem:[%s6617_s8 + $0xb0] ss:$12 sps:$4 sm:$0xff]  }
  0xdf   :  { %v5842_v39 = vadd.f32 %v316_v38, %v228_v33  ;;  %3357 = vmatpush1.bf16.msra.mxu0 %v4761_v32  ;;  %3792 = vadd.xlane.f32.xlu0 %v3791_v36  ;;  %v4817_v32 = vld [vmem:[%s6617_s8 + $0x8bc] ss:$12 sps:$4 sm:$0xff]   ;;  %v4823_v36 = vld [vmem:[%s6617_s8 + $0x8d4] ss:$12 sps:$4 sm:$0xff]  }
  0xe0   :  { %3358 = vmatprep.subr.bf16.mxu0 %v4769_v34  ;;  %v3794_v42 = vmul.f32 %v5840_v37, %v5829_v31  ;;  %4373 = vmatprep.subr.bf16.mxu1 %v4974_v29  ;;  %v4979_v34 = vld [vmem:[%s6617_s8 + $0x170] ss:$12 sps:$4 sm:$0xff]   ;;  %v4984_v38 = vld [vmem:[%s6617_s8 + $0x248] ss:$12 sps:$4 sm:$0xff]  }
  0xe1   :  { %v459_v43 = vpop.f32.mrb[4].mxu0  ;;  %v3806_v44 = vmul.f32 %v5842_v39, %v5840_v37  ;;  %v3803_v57 = vmul.f32 %v5842_v39, %v5826_v28  ;;  %v5005_v25 = vld [vmem:[%s6617_s8 + $0x230] ss:$12 sps:$4 sm:$0xff]   ;;  %v5006_v29 = vld [vmem:[%s6617_s8 + $0x3c8] ss:$12 sps:$4 sm:$0xff]  }
  0xe2   :  { %v5857_v46 = vadd.f32 %v459_v43, %v224_v30  ;;  %v461_v47 = vpop.f32.mrb[5].mxu0  ;;  %v4975_v30 = vld [vmem:[%s6617_s8 + $0x98] ss:$12 sps:$4 sm:$0xff]   ;;  %v4827_v43 = vld [vmem:[%s6617_s8 + $0x8e8] ss:$12 sps:$4 sm:$0xff]  }
  0xe3   :  { %3359 = vmatpush1.bf16.msra.mxu0 %v4767_v40  ;;  %3807 = vadd.xlane.f32.xlu1 %v3806_v44  ;;  %v5870_v54 = vadd.f32 %v461_v47, %v228_v33  ;;  %v4815_v33 = vld [vmem:[%s6617_s8 + $0x8b8] ss:$12 sps:$4 sm:$0xff]   ;;  %v4985_v40 = vld [vmem:[%s6617_s8 + $0x188] ss:$12 sps:$4 sm:$0xff]   ;;  %v4989_v44 = vld [vmem:[%s6617_s8 + $0x260] ss:$12 sps:$4 sm:$0xff]  }
  0xe4   :  { %3795 = vadd.xlane.f32.xlu0 %v3794_v42  ;;  %3360 = vmatprep.subr.bf16.mxu0 %v4775_v41  ;;  %v3797_v53 = vmul.f32 %v5857_v46, %v5829_v31  ;;  %v3809_v3 = vmul.f32 %v5857_v46, %v5842_v39  ;;  %v4821_v41 = vld [vmem:[%s6617_s8 + $0x8d0] ss:$12 sps:$4 sm:$0xff]   ;;  %v4829_v42 = vld [vmem:[%s6617_s8 + $0x8ec] ss:$12 sps:$4 sm:$0xff]  }
  0xe5   :  { %v3818_v0 = vmul.f32 %v5870_v54, %v5840_v37  ;;  %v3815_v11 = vmul.f32 %v5870_v54, %v5826_v28  ;;  %v3821_v55 = vmul.f32 %v5870_v54, %v5857_v46  ;;  %4374 = vmatpush3.bf16.msra.mxu1 %v4975_v30  ;;  %v4990_v47 = vld [vmem:[%s6617_s8 + $0x1a0] ss:$12 sps:$4 sm:$0xff]  }
  0xe6   :  { %4375 = vmatprep.subr.bf16.mxu1 %v4979_v34  ;;  %v4869_v34 = vld [vmem:[%s6617_s8 + $0x990] ss:$12 sps:$4 sm:$0xff]  }
  0xe7   :  { %3361 = vmatpush1.bf16.msra.mxu0 %v4773_v50  ;;  %3798 = vadd.xlane.f32.xlu1 %v3797_v53  ;;  %v4994_v50 = vld [vmem:[%s6617_s8 + $0x278] ss:$12 sps:$4 sm:$0xff]  }
  0xe8   :  { %3804 = vadd.xlane.f32.xlu0 %v3803_v57  ;;  %3362 = vmatprep.subr.bf16.mxu0 %v4781_v52  ;;  %v4833_v52 = vld [vmem:[%s6617_s8 + $0x900] ss:$12 sps:$4 sm:$0xff]   ;;  %v4995_v53 = vld [vmem:[%s6617_s8 + $0x1b8] ss:$12 sps:$4 sm:$0xff]   ;;  %v6012_v57 = vpack.c.bf16 %v547_v48, %v547_v48  ;;  %v5014_v48 = vld [vmem:[%s6617_s8 + $0x428] ss:$12 sps:$4 sm:$0xff]  }
  0xe9   :  { %4376 = vmatpush3.bf16.msra.mxu1 %v4980_v35  ;;  %v5008_v35 = vld [vmem:[%s6617_s8 + $0x3e0] ss:$12 sps:$4 sm:$0xff]  }
  0xea   :  { %4383 = vmatprep.subr.bf16.mxu1 %v4984_v38  ;;  %v5009_v38 = vld [vmem:[%s6617_s8 + $0x320] ss:$12 sps:$4 sm:$0xff]  }
  0xeb   :  { %3363 = vmatpush1.bf16.msra.mxu0 %v4779_v61  ;;  %3819 = vadd.xlane.f32.xlu1 %v3818_v0  ;;  %v4997_v61 = vld [vmem:[%s6617_s8 + $0x1d0] ss:$12 sps:$4 sm:$0xff]   ;;  %v4998_v0 = vld [vmem:[%s6617_s8 + $0x2a8] ss:$12 sps:$4 sm:$0xff]  }
  0xec   :  { %3810 = vadd.xlane.f32.xlu0 %v3809_v3  ;;  %3364 = vmatprep.subr.bf16.mxu0 %v4787_v63  ;;  %v4839_v63 = vld [vmem:[%s6617_s8 + $0x918] ss:$12 sps:$4 sm:$0xff]   ;;  %v4845_v3 = vld [vmem:[%s6617_s8 + $0x930] ss:$12 sps:$4 sm:$0xff]  }
  0xed   :  { %3504 = vmatmul.mubr.bf16.vlgmr.msra.gmra.mrb[12].mxu1 %v5565_v59  ;;  %v544_v59 = vld [vmem:[%s6620_s3 + $0x50] sm:$0xff] }
  0xee   :  { %4384 = vmatpush3.bf16.msra.mxu1 %v4985_v40  ;;  %3543 = vmatprep.mubr.bf16.mxu1 %v5770_v7  ;;  %v6004_v7 = vpack.c.bf16 %v544_v59, %v544_v59  ;;  %v4875_v40 = vld [vmem:[%s6617_s8 + $0x9a8] ss:$12 sps:$4 sm:$0xff]   ;;  %v5013_v59 = vld [vmem:[%s6617_s8 + $0x350] ss:$12 sps:$4 sm:$0xff]  }
  0xef   :  { %3365 = vmatpush1.bf16.msra.mxu0 %v4785_v1  ;;  %4385 = vmatprep.subr.bf16.mxu1 %v4989_v44  ;;  %v4847_v1 = vld [vmem:[%s6617_s8 + $0x934] ss:$12 sps:$4 sm:$0xff]   ;;  %v5012_v44 = vld [vmem:[%s6617_s8 + $0x410] ss:$12 sps:$4 sm:$0xff]  }
  0xf0   :  { %3816 = vadd.xlane.f32.xlu0 %v3815_v11  ;;  %3366 = vmatprep.subr.bf16.mxu0 %v4793_v5  ;;  %v4853_v5 = vld [vmem:[%s6617_s8 + $0x94c] ss:$12 sps:$4 sm:$0xff]  }
  0xf1   :  { %v5002_v11 = vld [vmem:[%s6617_s8 + $0x2d8] ss:$12 sps:$4 sm:$0xff]  }
  0xf2   :  { %4386 = vmatpush3.bf16.msra.mxu1 %v4990_v47  ;;  %v4895_v47 = vld [vmem:[%s6617_s8 + $0x9f4] ss:$12 sps:$4 sm:$0xff]  }
  0xf3   :  { %3367 = vmatpush1.bf16.msra.mxu0 %v4791_v6  ;;  %4387 = vmatprep.subr.bf16.mxu1 %v4994_v50  ;;  %v5001_v6 = vld [vmem:[%s6617_s8 + $0x200] ss:$12 sps:$4 sm:$0xff]   ;;  %v5015_v50 = vld [vmem:[%s6617_s8 + $0x368] ss:$12 sps:$4 sm:$0xff]  }
  0xf4   :  { %3822 = vadd.xlane.f32.xlu0 %v3821_v55  ;;  %3368 = vmatprep.subr.bf16.mxu0 %v4799_v15  ;;  %v6055_v15 = vpop.f32.mrb[0].mxu1 }
  0xf5   :  { %v4541_v55 = vpop.f32.mrb[1].mxu1 }
  0xf6   :  { %4388 = vmatpush3.bf16.msra.mxu1 %v4995_v53  ;;  %v5016_v53 = vld [vmem:[%s6617_s8 + $0x440] ss:$12 sps:$4 sm:$0xff]  }
  0xf7   :  { %3369 = vmatpush1.bf16.msra.mxu0 %v4797_v20  ;;  %4389 = vmatprep.subr.bf16.mxu1 %v4996_v58  ;;  %v5004_v20 = vld [vmem:[%s6617_s8 + $0x2f0] ss:$12 sps:$4 sm:$0xff]   ;;  %v5017_v58 = vld [vmem:[%s6617_s8 + $0x380] ss:$12 sps:$4 sm:$0xff]  }
  0xf8   :  { %3370 = vmatprep.subr.bf16.mxu0 %v4805_v22  ;;  %v6066_v22 = vpop.f32.mrb[2].mxu1  ;;  %v5024_v55 = vld [vmem:[%s6617_s8 + $0x560] ss:$12 sps:$4 sm:$0xff]  }
  0xf9   :  { %v4546_v24 = vpop.f32.mrb[3].mxu1 }
  0xfa   :  { %4390 = vmatpush3.bf16.msra.mxu1 %v4997_v61  ;;  %v4899_v61 = vld [vmem:[%s6617_s8 + $0xa08] ss:$12 sps:$4 sm:$0xff]   ;;  %v546_v24 = vld [vmem:[%s6620_s3 + $0x60] sm:$0xff] }
  0xfb   :  { %3371 = vmatpush1.bf16.msra.mxu0 %v4803_v23  ;;  %4391 = vmatprep.subr.bf16.mxu1 %v4998_v0  ;;  %v4865_v23 = vld [vmem:[%s6617_s8 + $0x97c] ss:$12 sps:$4 sm:$0xff]   ;;  %v4907_v0 = vld [vmem:[%s6617_s8 + $0xa24] ss:$12 sps:$4 sm:$0xff]  }
  0xfc   :  { %3372 = vmatprep.subr.bf16.mxu0 %v4811_v26  ;;  %v6074_v26 = vpop.f32.mrb[4].mxu1 }
  0xfd   :  { %v4551_v30 = vpop.f32.mrb[5].mxu1 }
  0xfe   :  { %4392 = vmatpush3.bf16.msra.mxu1 %v4999_v2  ;;  %v4905_v2 = vld [vmem:[%s6617_s8 + $0xa20] ss:$12 sps:$4 sm:$0xff]  }
  0xff   :  { %3373 = vmatpush1.bf16.msra.mxu0 %v4809_v27  ;;  %4393 = vmatprep.subr.bf16.mxu1 %v5000_v4  ;;  %v4863_v27 = vld [vmem:[%s6617_s8 + $0x978] ss:$12 sps:$4 sm:$0xff]   ;;  %v4913_v4 = vld [vmem:[%s6617_s8 + $0xa3c] ss:$12 sps:$4 sm:$0xff]   ;;  %v4926_v30 = vld [vmem:[%s6617_s8 + $0xa80] ss:$12 sps:$4 sm:$0xff]  }
 0x100   :  { %3374 = vmatprep.subr.bf16.mxu0 %v4817_v32  ;;  %v4871_v32 = vld [vmem:[%s6617_s8 + $0x994] ss:$12 sps:$4 sm:$0xff]  }
 0x102   :  { %4394 = vmatpush3.bf16.msra.mxu1 %v5001_v6  ;;  %v4911_v6 = vld [vmem:[%s6617_s8 + $0xa38] ss:$12 sps:$4 sm:$0xff]  }
 0x103   :  { %3375 = vmatpush1.bf16.msra.mxu0 %v4815_v33  ;;  %4395 = vmatprep.subr.bf16.mxu1 %v5002_v11  ;;  %v5007_v33 = vld [vmem:[%s6617_s8 + $0x308] ss:$12 sps:$4 sm:$0xff]  }
 0x104   :  { %3376 = vmatprep.subr.bf16.mxu0 %v4823_v36  ;;  %v4877_v36 = vld [vmem:[%s6617_s8 + $0x9ac] ss:$12 sps:$4 sm:$0xff]   ;;  %v4919_v11 = vld [vmem:[%s6617_s8 + $0xa54] ss:$12 sps:$4 sm:$0xff]  }
 0x106   :  { %4396 = vmatpush3.bf16.msra.mxu1 %v5003_v16  ;;  %v4917_v16 = vld [vmem:[%s6617_s8 + $0xa50] ss:$12 sps:$4 sm:$0xff]  }
 0x107   :  { %3377 = vmatpush1.bf16.msra.mxu0 %v4821_v41  ;;  %4397 = vmatprep.subr.bf16.mxu1 %v5004_v20  ;;  %v5010_v41 = vld [vmem:[%s6617_s8 + $0x3f8] ss:$12 sps:$4 sm:$0xff]   ;;  %v5025_v20 = vld [vmem:[%s6617_s8 + $0x4a0] ss:$12 sps:$4 sm:$0xff]  }
 0x108   :  { %3378 = vmatprep.subr.bf16.mxu0 %v4829_v42  ;;  %v4881_v42 = vld [vmem:[%s6617_s8 + $0x9c0] ss:$12 sps:$4 sm:$0xff]  }
 0x10a   :  { %4398 = vmatpush3.bf16.msra.mxu1 %v5005_v25  ;;  %v4928_v25 = vld [vmem:[%s6617_s8 + $0xa84] ss:$12 sps:$4 sm:$0xff]  }
 0x10b   :  { %3379 = vmatpush1.bf16.msra.mxu0 %v4827_v43  ;;  %4405 = vmatprep.subr.bf16.mxu1 %v5006_v29  ;;  %v5011_v43 = vld [vmem:[%s6617_s8 + $0x338] ss:$12 sps:$4 sm:$0xff]  }
 0x10c   :  { %3389 = vmatprep.subr.bf16.mxu0 %v4835_v45  ;;  %v4887_v45 = vld [vmem:[%s6617_s8 + $0x9d8] ss:$12 sps:$4 sm:$0xff]  }
 0x10d   :  { %3544 = vmatmul.mubr.bf16.vlgmr.msra.gmra.mrb[16].mxu1 %v5775_v9  ;;  %v4883_v9 = vld [vmem:[%s6617_s8 + $0x9c4] ss:$12 sps:$4 sm:$0xff]  }
 0x10e   :  { %3381 = vmatmul.mubr.bf16.vlgmr.msra.gmra.mrb[8].mxu0 %v6004_v7  ;;  %4406 = vmatpush3.bf16.msra.mxu1 %v5007_v33  ;;  %v5027_v29 = vld [vmem:[%s6617_s8 + $0x4b8] ss:$12 sps:$4 sm:$0xff]   ;;  %v4931_v33 = vld [vmem:[%s6617_s8 + $0xa9c] ss:$12 sps:$4 sm:$0xff]  }
 0x10f   :  { %3390 = vmatpush1.bf16.msra.mxu0 %v4833_v52  ;;  %3421 = vmatprep.mubr.bf16.mxu0 %v6012_v57  ;;  %v4893_v52 = vld [vmem:[%s6617_s8 + $0x9f0] ss:$12 sps:$4 sm:$0xff]  }
 0x110   :  { %3391 = vmatprep.subr.bf16.mxu0 %v4841_v56  ;;  %3583 = vmatprep.mubr.bf16.mxu1 %v5243_v18  ;;  %v4889_v18 = vld [vmem:[%s6617_s8 + $0x9dc] ss:$12 sps:$4 sm:$0xff]   ;;  %v4901_v56 = vld [vmem:[%s6617_s8 + $0xa0c] ss:$12 sps:$4 sm:$0xff]  }
 0x111   :  { %4407 = vmatprep.subr.bf16.mxu1 %v5008_v35  ;;  %v5029_v35 = vld [vmem:[%s6617_s8 + $0x4d0] ss:$12 sps:$4 sm:$0xff]  }
 0x112   :  { %4408 = vmatpush3.bf16.msra.mxu1 %v5009_v38  ;;  %v5030_v38 = vld [vmem:[%s6617_s8 + $0x5a8] ss:$12 sps:$4 sm:$0xff]  }
 0x113   :  { %3392 = vmatpush1.bf16.msra.mxu0 %v4839_v63  ;;  %4409 = vmatprep.subr.bf16.mxu1 %v5010_v41  ;;  %v5018_v63 = vld [vmem:[%s6617_s8 + $0x458] ss:$12 sps:$4 sm:$0xff]   ;;  %v5031_v41 = vld [vmem:[%s6617_s8 + $0x4e8] ss:$12 sps:$4 sm:$0xff]  }
 0x114   :  { %3393 = vmatprep.subr.bf16.mxu0 %v4847_v1  ;;  %v5019_v1 = vld [vmem:[%s6617_s8 + $0x398] ss:$12 sps:$4 sm:$0xff]  }
 0x116   :  { %4410 = vmatpush3.bf16.msra.mxu1 %v5011_v43  ;;  %v5033_v43 = vld [vmem:[%s6617_s8 + $0x500] ss:$12 sps:$4 sm:$0xff]  }
 0x117   :  { %3394 = vmatpush1.bf16.msra.mxu0 %v4845_v3  ;;  %4411 = vmatprep.subr.bf16.mxu1 %v5012_v44  ;;  %v5020_v3 = vld [vmem:[%s6617_s8 + $0x470] ss:$12 sps:$4 sm:$0xff]   ;;  %v4935_v44 = vld [vmem:[%s6617_s8 + $0xac8] ss:$12 sps:$4 sm:$0xff]  }
 0x118   :  { %3395 = vmatprep.subr.bf16.mxu0 %v4853_v5  ;;  %v5021_v5 = vld [vmem:[%s6617_s8 + $0x3b0] ss:$12 sps:$4 sm:$0xff]  }
 0x11a   :  { %4412 = vmatpush3.bf16.msra.mxu1 %v5013_v59  ;;  %v5035_v59 = vld [vmem:[%s6617_s8 + $0x518] ss:$12 sps:$4 sm:$0xff]  }
 0x11b   :  { %3396 = vmatpush1.bf16.msra.mxu0 %v4851_v8  ;;  %4413 = vmatprep.subr.bf16.mxu1 %v5014_v48  ;;  %v5022_v8 = vld [vmem:[%s6617_s8 + $0x548] ss:$12 sps:$4 sm:$0xff]   ;;  %v4938_v48 = vld [vmem:[%s6617_s8 + $0xae0] ss:$12 sps:$4 sm:$0xff]  }
 0x11c   :  { %3397 = vmatprep.subr.bf16.mxu0 %v4859_v14  ;;  %v5023_v14 = vld [vmem:[%s6617_s8 + $0x488] ss:$12 sps:$4 sm:$0xff]  }
 0x11e   :  { %4414 = vmatpush3.bf16.msra.mxu1 %v5015_v50  ;;  %v5036_v50 = vld [vmem:[%s6617_s8 + $0x5f0] ss:$12 sps:$4 sm:$0xff]  }
 0x11f   :  { %3398 = vmatpush1.bf16.msra.mxu0 %v4857_v19  ;;  %4415 = vmatprep.subr.bf16.mxu1 %v5016_v53  ;;  %v4925_v19 = vld [vmem:[%s6617_s8 + $0xa6c] ss:$12 sps:$4 sm:$0xff]   ;;  %v5037_v53 = vld [vmem:[%s6617_s8 + $0x530] ss:$12 sps:$4 sm:$0xff]  }
 0x120   :  { %3399 = vmatprep.subr.bf16.mxu0 %v4865_v23  ;;  %v4923_v23 = vld [vmem:[%s6617_s8 + $0xa68] ss:$12 sps:$4 sm:$0xff]  }
 0x122   :  { %4416 = vmatpush3.bf16.msra.mxu1 %v5017_v58  ;;  %v5038_v58 = vld [vmem:[%s6617_s8 + $0x6c8] ss:$12 sps:$4 sm:$0xff]  }
 0x123   :  { %3400 = vmatpush1.bf16.msra.mxu0 %v4863_v27  ;;  %4417 = vmatprep.subr.bf16.mxu1 %v5018_v63  ;;  %v6215_v27 = vpack.c.bf16 %v546_v24, %v546_v24  ;;  %v5039_v63 = vld [vmem:[%s6617_s8 + $0x608] ss:$12 sps:$4 sm:$0xff]   ;;  %v5048_v24 = vld [vmem:[%s6617_s8 + $0x740] ss:$12 sps:$4 sm:$0xff]  }
 0x124   :  { %3401 = vmatprep.subr.bf16.mxu0 %v4871_v32 }
 0x126   :  { %4418 = vmatpush3.bf16.msra.mxu1 %v5019_v1  ;;  %v5040_v1 = vld [vmem:[%s6617_s8 + $0x6e0] ss:$12 sps:$4 sm:$0xff]  }
 0x127   :  { %3402 = vmatpush1.bf16.msra.mxu0 %v4869_v34  ;;  %4419 = vmatprep.subr.bf16.mxu1 %v5020_v3  ;;  %v5028_v34 = vld [vmem:[%s6617_s8 + $0x590] ss:$12 sps:$4 sm:$0xff]   ;;  %v5041_v3 = vld [vmem:[%s6617_s8 + $0x620] ss:$12 sps:$4 sm:$0xff]  }
 0x128   :  { %3403 = vmatprep.subr.bf16.mxu0 %v4877_v36  ;;  %v4929_v36 = vld [vmem:[%s6617_s8 + $0xa98] ss:$12 sps:$4 sm:$0xff]  }
 0x12a   :  { %4420 = vmatpush3.bf16.msra.mxu1 %v5021_v5  ;;  %v5042_v5 = vld [vmem:[%s6617_s8 + $0x6f8] ss:$12 sps:$4 sm:$0xff]  }
 0x12b   :  { %3404 = vmatpush1.bf16.msra.mxu0 %v4875_v40  ;;  %4427 = vmatprep.subr.bf16.mxu1 %v5022_v8  ;;  %v4934_v40 = vld [vmem:[%s6617_s8 + $0xab4] ss:$12 sps:$4 sm:$0xff]   ;;  %v5044_v8 = vld [vmem:[%s6617_s8 + $0x710] ss:$12 sps:$4 sm:$0xff]  }
 0x12c   :  { %3405 = vmatprep.subr.bf16.mxu0 %v4883_v9  ;;  %v4932_v9 = vld [vmem:[%s6617_s8 + $0xab0] ss:$12 sps:$4 sm:$0xff]  }
 0x12d   :  { %3584 = vmatmul.mubr.bf16.vlgmr.msra.gmra.mrb[20].mxu1 %v5351_v49  ;;  %v5026_v49 = vld [vmem:[%s6617_s8 + $0x578] ss:$12 sps:$4 sm:$0xff]  }
 0x12e   :  { %4428 = vmatpush3.bf16.msra.mxu1 %v5023_v14  ;;  %3623 = vmatprep.mubr.bf16.mxu1 %v5356_v51  ;;  %v549_v51 = vld [vmem:[%s6620_s3 + $0x78] sm:$0xff] }
 0x12f   :  { %3406 = vmatpush1.bf16.msra.mxu0 %v4881_v42  ;;  %4429 = vmatprep.subr.bf16.mxu1 %v5024_v55  ;;  %v6223_v32 = vpack.c.bf16 %v549_v51, %v549_v51  ;;  %v5032_v42 = vld [vmem:[%s6617_s8 + $0x5c0] ss:$12 sps:$4 sm:$0xff]   ;;  %v5045_v14 = vld [vmem:[%s6617_s8 + $0x650] ss:$12 sps:$4 sm:$0xff]   ;;  %v5046_v55 = vld [vmem:[%s6617_s8 + $0x728] ss:$12 sps:$4 sm:$0xff]  }
 0x130   :  { %3407 = vmatprep.subr.bf16.mxu0 %v4889_v18  ;;  %v4937_v18 = vld [vmem:[%s6617_s8 + $0xacc] ss:$12 sps:$4 sm:$0xff]   ;;  %v4971_v51 = vld [vmem:[%s6617_s8 + $0xb88] ss:$12 sps:$4 sm:$0xff]  }
 0x132   :  { %4430 = vmatpush3.bf16.msra.mxu1 %v5025_v20  ;;  %v5047_v20 = vld [vmem:[%s6617_s8 + $0x668] ss:$12 sps:$4 sm:$0xff]  }
 0x133   :  { %3408 = vmatpush1.bf16.msra.mxu0 %v4887_v45  ;;  %4431 = vmatprep.subr.bf16.mxu1 %v5026_v49  ;;  %v5034_v45 = vld [vmem:[%s6617_s8 + $0x5d8] ss:$12 sps:$4 sm:$0xff]  }
 0x134   :  { %3409 = vmatprep.subr.bf16.mxu0 %v4895_v47  ;;  %v4940_v47 = vld [vmem:[%s6617_s8 + $0xae4] ss:$12 sps:$4 sm:$0xff]   ;;  %v4973_v49 = vld [vmem:[%s6617_s8 + $0xb8c] ss:$12 sps:$4 sm:$0xff]  }
 0x136   :  { %4432 = vmatpush3.bf16.msra.mxu1 %v5027_v29  ;;  %v5050_v29 = vld [vmem:[%s6617_s8 + $0x758] ss:$12 sps:$4 sm:$0xff]  }
 0x137   :  { %3410 = vmatpush1.bf16.msra.mxu0 %v4893_v52  ;;  %4433 = vmatprep.subr.bf16.mxu1 %v5028_v34  ;;  %v4943_v52 = vld [vmem:[%s6617_s8 + $0xafc] ss:$12 sps:$4 sm:$0xff]   ;;  %v4976_v34 = vld [vmem:[%s6617_s8 + $0xba0] ss:$12 sps:$4 sm:$0xff]  }
 0x138   :  { %3411 = vmatprep.subr.bf16.mxu0 %v4901_v56  ;;  %v4941_v56 = vld [vmem:[%s6617_s8 + $0xaf8] ss:$12 sps:$4 sm:$0xff]  }
 0x13a   :  { %4434 = vmatpush3.bf16.msra.mxu1 %v5029_v35  ;;  %v5052_v35 = vld [vmem:[%s6617_s8 + $0x770] ss:$12 sps:$4 sm:$0xff]  }
 0x13b   :  { %3412 = vmatpush1.bf16.msra.mxu0 %v4899_v61  ;;  %4435 = vmatprep.subr.bf16.mxu1 %v5030_v38  ;;  %v4948_v61 = vld [vmem:[%s6617_s8 + $0xb14] ss:$12 sps:$4 sm:$0xff]   ;;  %v5053_v38 = vld [vmem:[%s6617_s8 + $0x6b0] ss:$12 sps:$4 sm:$0xff]  }
 0x13c   :  { %3413 = vmatprep.subr.bf16.mxu0 %v4907_v0  ;;  %v4946_v0 = vld [vmem:[%s6617_s8 + $0xb10] ss:$12 sps:$4 sm:$0xff]  }
 0x13e   :  { %4436 = vmatpush3.bf16.msra.mxu1 %v5031_v41  ;;  %v5054_v41 = vld [vmem:[%s6617_s8 + $0x848] ss:$12 sps:$4 sm:$0xff]  }
 0x13f   :  { %3414 = vmatpush1.bf16.msra.mxu0 %v4905_v2  ;;  %4437 = vmatprep.subr.bf16.mxu1 %v5032_v42  ;;  %v4953_v2 = vld [vmem:[%s6617_s8 + $0xb2c] ss:$12 sps:$4 sm:$0xff]   ;;  %v5055_v42 = vld [vmem:[%s6617_s8 + $0x788] ss:$12 sps:$4 sm:$0xff]  }
 0x140   :  { %3415 = vmatprep.subr.bf16.mxu0 %v4913_v4  ;;  %v4951_v4 = vld [vmem:[%s6617_s8 + $0xb28] ss:$12 sps:$4 sm:$0xff]  }
 0x142   :  { %4438 = vmatpush3.bf16.msra.mxu1 %v5033_v43  ;;  %v5056_v43 = vld [vmem:[%s6617_s8 + $0x860] ss:$12 sps:$4 sm:$0xff]  }
 0x143   :  { %3416 = vmatpush1.bf16.msra.mxu0 %v4911_v6  ;;  %4439 = vmatprep.subr.bf16.mxu1 %v5034_v45  ;;  %v4956_v6 = vld [vmem:[%s6617_s8 + $0xb40] ss:$12 sps:$4 sm:$0xff]  }
 0x144   :  { %3417 = vmatprep.subr.bf16.mxu0 %v4919_v11  ;;  %v4963_v11 = vld [vmem:[%s6617_s8 + $0xb5c] ss:$12 sps:$4 sm:$0xff]   ;;  %v5057_v45 = vld [vmem:[%s6617_s8 + $0x7a0] ss:$12 sps:$4 sm:$0xff]  }
 0x146   :  { %4440 = vmatpush3.bf16.msra.mxu1 %v5035_v59  ;;  %v548_v59 = vld [vmem:[%s6620_s3 + $0x70] sm:$0xff] }
 0x147   :  { %3418 = vmatpush1.bf16.msra.mxu0 %v4917_v16  ;;  %4441 = vmatprep.subr.bf16.mxu1 %v5036_v50  ;;  %v4961_v16 = vld [vmem:[%s6617_s8 + $0xb58] ss:$12 sps:$4 sm:$0xff]   ;;  %v5060_v50 = vld [vmem:[%s6617_s8 + $0x890] ss:$12 sps:$4 sm:$0xff]  }
 0x148   :  { %3419 = vmatprep.subr.bf16.mxu0 %v4925_v19  ;;  %v4968_v19 = vld [vmem:[%s6617_s8 + $0xb74] ss:$12 sps:$4 sm:$0xff]  }
 0x14a   :  { %4442 = vmatpush3.bf16.msra.mxu1 %v5037_v53  ;;  %v5062_v53 = vld [vmem:[%s6617_s8 + $0x8a8] ss:$12 sps:$4 sm:$0xff]  }
 0x14b   :  { %3420 = vmatpush1.bf16.msra.mxu0 %v4923_v23  ;;  %4449 = vmatprep.subr.bf16.mxu1 %v5038_v58  ;;  %v4966_v23 = vld [vmem:[%s6617_s8 + $0xb70] ss:$12 sps:$4 sm:$0xff]   ;;  %v5064_v58 = vld [vmem:[%s6617_s8 + $0x8c0] ss:$12 sps:$4 sm:$0xff]  }
 0x14c   :  { %3430 = vmatprep.subr.bf16.mxu0 %v4928_v25  ;;  %v5049_v25 = vld [vmem:[%s6617_s8 + $0x680] ss:$12 sps:$4 sm:$0xff]  }
 0x14d   :  { %3624 = vmatmul.mubr.bf16.vlgmr.msra.gmra.mrb[24].mxu1 %v5567_v60  ;;  %v4958_v60 = vld [vmem:[%s6617_s8 + $0xb44] ss:$12 sps:$4 sm:$0xff]  }
 0x14e   :  { %3422 = vmatmul.mubr.bf16.vlgmr.msra.gmra.mrb[8].mxu0 %v6215_v27  ;;  %4450 = vmatpush3.bf16.msra.mxu1 %v5039_v63  ;;  %v5066_v63 = vld [vmem:[%s6617_s8 + $0x8d8] ss:$12 sps:$4 sm:$0xff]  }
 0x14f   :  { %3431 = vmatpush1.bf16.msra.mxu0 %v4926_v30  ;;  %3462 = vmatprep.mubr.bf16.mxu0 %v6223_v32  ;;  %v4978_v30 = vld [vmem:[%s6617_s8 + $0xba4] ss:$12 sps:$4 sm:$0xff]  }
 0x150   :  { %3432 = vmatprep.subr.bf16.mxu0 %v4931_v33  ;;  %3663 = vmatprep.mubr.bf16.mxu1 %v5573_v62  ;;  %v5043_v62 = vld [vmem:[%s6617_s8 + $0x638] ss:$12 sps:$4 sm:$0xff]  }
 0x151   :  { %4451 = vmatprep.subr.bf16.mxu1 %v5040_v1  ;;  %v5051_v33 = vld [vmem:[%s6617_s8 + $0x698] ss:$12 sps:$4 sm:$0xff]   ;;  %v5068_v1 = vld [vmem:[%s6617_s8 + $0x8f0] ss:$12 sps:$4 sm:$0xff]  }
 0x152   :  { %4452 = vmatpush3.bf16.msra.mxu1 %v5041_v3  ;;  %v5069_v3 = vld [vmem:[%s6617_s8 + $0x830] ss:$12 sps:$4 sm:$0xff]  }
 0x153   :  { %3433 = vmatpush1.bf16.msra.mxu0 %v4929_v36  ;;  %4453 = vmatprep.subr.bf16.mxu1 %v5042_v5  ;;  %v4983_v36 = vld [vmem:[%s6617_s8 + $0xbbc] ss:$12 sps:$4 sm:$0xff]  }
 0x154   :  { %3434 = vmatprep.subr.bf16.mxu0 %v4934_v40  ;;  %v4981_v40 = vld [vmem:[%s6617_s8 + $0xbb8] ss:$12 sps:$4 sm:$0xff]   ;;  %v5070_v5 = vld [vmem:[%s6617_s8 + $0x9c8] ss:$12 sps:$4 sm:$0xff]  }
 0x156   :  { %4454 = vmatpush3.bf16.msra.mxu1 %v5043_v62 }
 0x157   :  { %3435 = vmatpush1.bf16.msra.mxu0 %v4932_v9  ;;  %4455 = vmatprep.subr.bf16.mxu1 %v5044_v8  ;;  %v4988_v9 = vld [vmem:[%s6617_s8 + $0xbd4] ss:$12 sps:$4 sm:$0xff]  }
 0x158   :  { %3436 = vmatprep.subr.bf16.mxu0 %v4937_v18  ;;  %v4986_v18 = vld [vmem:[%s6617_s8 + $0xbd0] ss:$12 sps:$4 sm:$0xff]   ;;  %v5072_v8 = vld [vmem:[%s6617_s8 + $0x9e0] ss:$12 sps:$4 sm:$0xff]  }
 0x15a   :  { %4456 = vmatpush3.bf16.msra.mxu1 %v5045_v14  ;;  %v5074_v14 = vld [vmem:[%s6617_s8 + $0x9f8] ss:$12 sps:$4 sm:$0xff]  }
 0x15b   :  { %3437 = vmatpush1.bf16.msra.mxu0 %v4935_v44  ;;  %4457 = vmatprep.subr.bf16.mxu1 %v5046_v55  ;;  %v4993_v44 = vld [vmem:[%s6617_s8 + $0xbec] ss:$12 sps:$4 sm:$0xff]   ;;  %v5078_v55 = vld [vmem:[%s6617_s8 + $0xa28] ss:$12 sps:$4 sm:$0xff]  }
 0x15c   :  { %3438 = vmatprep.subr.bf16.mxu0 %v4940_v47  ;;  %v4991_v47 = vld [vmem:[%s6617_s8 + $0xbe8] ss:$12 sps:$4 sm:$0xff]  }
 0x15e   :  { %4458 = vmatpush3.bf16.msra.mxu1 %v5047_v20  ;;  %v5080_v20 = vld [vmem:[%s6617_s8 + $0xa40] ss:$12 sps:$4 sm:$0xff]  }
 0x15f   :  { %3439 = vmatpush1.bf16.msra.mxu0 %v4938_v48  ;;  %4459 = vmatprep.subr.bf16.mxu1 %v5048_v24  ;;  %v6417_v48 = vpack.c.bf16 %v548_v59, %v548_v59  ;;  %v5082_v24 = vld [vmem:[%s6617_s8 + $0xa58] ss:$12 sps:$4 sm:$0xff]  }
 0x160   :  { %3440 = vmatprep.subr.bf16.mxu0 %v4943_v52  ;;  %v5061_v52 = vld [vmem:[%s6617_s8 + $0x7d0] ss:$12 sps:$4 sm:$0xff]  }
 0x162   :  { %4460 = vmatpush3.bf16.msra.mxu1 %v5049_v25  ;;  %v5084_v25 = vld [vmem:[%s6617_s8 + $0xa70] ss:$12 sps:$4 sm:$0xff]  }
 0x163   :  { %3441 = vmatpush1.bf16.msra.mxu0 %v4941_v56  ;;  %4461 = vmatprep.subr.bf16.mxu1 %v5050_v29  ;;  %v5063_v56 = vld [vmem:[%s6617_s8 + $0x7e8] ss:$12 sps:$4 sm:$0xff]  }
 0x164   :  { %3442 = vmatprep.subr.bf16.mxu0 %v4948_v61  ;;  %v5065_v61 = vld [vmem:[%s6617_s8 + $0x800] ss:$12 sps:$4 sm:$0xff]   ;;  %v5086_v29 = vld [vmem:[%s6617_s8 + $0xb48] ss:$12 sps:$4 sm:$0xff]  }
 0x166   :  { %4462 = vmatpush3.bf16.msra.mxu1 %v5051_v33  ;;  %v5088_v33 = vld [vmem:[%s6617_s8 + $0xb60] ss:$12 sps:$4 sm:$0xff]  }
 0x167   :  { %3443 = vmatpush1.bf16.msra.mxu0 %v4946_v0  ;;  %4463 = vmatprep.subr.bf16.mxu1 %v5052_v35  ;;  %v5067_v0 = vld [vmem:[%s6617_s8 + $0x818] ss:$12 sps:$4 sm:$0xff]  }
 0x168   :  { %3444 = vmatprep.subr.bf16.mxu0 %v4953_v2  ;;  %v5090_v35 = vld [vmem:[%s6617_s8 + $0xb78] ss:$12 sps:$4 sm:$0xff]  }
 0x16a   :  { %4464 = vmatpush3.bf16.msra.mxu1 %v5053_v38  ;;  %v5094_v38 = vld [vmem:[%s6617_s8 + $0xba8] ss:$12 sps:$4 sm:$0xff]  }
 0x16b   :  { %3445 = vmatpush1.bf16.msra.mxu0 %v4951_v4  ;;  %4471 = vmatprep.subr.bf16.mxu1 %v5054_v41  ;;  %v5096_v41 = vld [vmem:[%s6617_s8 + $0xbc0] ss:$12 sps:$4 sm:$0xff]  }
 0x16c   :  { %3446 = vmatprep.subr.bf16.mxu0 %v4958_v60 }
 0x16d   :  { %3664 = vmatmul.mubr.bf16.vlgmr.msra.gmra.mrb[28].mxu1 %v5778_v10  ;;  %v5058_v10 = vld [vmem:[%s6617_s8 + $0x878] ss:$12 sps:$4 sm:$0xff]  }
 0x16e   :  { %4472 = vmatpush3.bf16.msra.mxu1 %v5055_v42  ;;  %3703 = vmatprep.mubr.bf16.mxu1 %v5785_v13  ;;  %v5059_v13 = vld [vmem:[%s6617_s8 + $0x7b8] ss:$12 sps:$4 sm:$0xff]  }
 0x16f   :  { %3447 = vmatpush1.bf16.msra.mxu0 %v4956_v6  ;;  %4473 = vmatprep.subr.bf16.mxu1 %v5056_v43  ;;  %v6450_v2 = vpop.f32.mrb[8].mxu1  ;;  %v5071_v6 = vld [vmem:[%s6617_s8 + $0x908] ss:$12 sps:$4 sm:$0xff]   ;;  %v5098_v42 = vld [vmem:[%s6617_s8 + $0xbd8] ss:$12 sps:$4 sm:$0xff]  }
 0x170   :  { %3448 = vmatprep.subr.bf16.mxu0 %v4963_v11  ;;  %v6455_v4 = vpop.f32.mrb[9].mxu1  ;;  %v5073_v11 = vld [vmem:[%s6617_s8 + $0x920] ss:$12 sps:$4 sm:$0xff]   ;;  %v5100_v43 = vld [vmem:[%s6617_s8 + $0xbf0] ss:$12 sps:$4 sm:$0xff]  }
 0x171   :  { %v3222_v60 = vpop.f32.mrb[10].mxu1 }
 0x172   :  { %4474 = vmatpush3.bf16.msra.mxu1 %v5057_v45  ;;  %v3223_v62 = vpop.f32.mrb[11].mxu1  ;;  %v1078_v45 = vld [vmem:[%s6623_s9] sm:$0x7]  ;;  %s5111_s9 = smov 120  }
 0x173   :  { %3449 = vmatpush1.bf16.msra.mxu0 %v4961_v16  ;;  %4475 = vmatprep.subr.bf16.mxu1 %v5058_v10  ;;  %v5075_v16 = vld [vmem:[%s6617_s8 + $0x938] ss:$12 sps:$4 sm:$0xff]   ;;  %v1087_v59 = vrot.slane %v1078_v45, %v5813_v21 }
 0x174   :  { %3450 = vmatprep.subr.bf16.mxu0 %v4968_v19  ;;  %v5079_v19 = vld [vmem:[%s6617_s8 + $0x968] ss:$12 sps:$4 sm:$0xff]  }
 0x176   :  { %4476 = vmatpush3.bf16.msra.mxu1 %v5059_v13  ;;  %v4554_v13 = vadd.f32 %v6455_v4, %v1087_v59 }
 0x177   :  { %3451 = vmatpush1.bf16.msra.mxu0 %v4966_v23  ;;  %4477 = vmatprep.subr.bf16.mxu1 %v5060_v50  ;;  %v5081_v23 = vld [vmem:[%s6617_s8 + $0x980] ss:$12 sps:$4 sm:$0xff]  }
 0x178   :  { %3452 = vmatprep.subr.bf16.mxu0 %v4973_v49  ;;  %v5083_v49 = vld [vmem:[%s6617_s8 + $0x998] ss:$12 sps:$4 sm:$0xff]  }
 0x17a   :  { %4478 = vmatpush3.bf16.msra.mxu1 %v5061_v52 }
 0x17b   :  { %3453 = vmatpush1.bf16.msra.mxu0 %v4971_v51  ;;  %4479 = vmatprep.subr.bf16.mxu1 %v5062_v53  ;;  %v5085_v51 = vld [vmem:[%s6617_s8 + $0x9b0] ss:$12 sps:$4 sm:$0xff]  }
 0x17c   :  { %3454 = vmatprep.subr.bf16.mxu0 %v4978_v30  ;;  %v5087_v30 = vld [vmem:[%s6617_s8 + $0xa88] ss:$12 sps:$4 sm:$0xff]  }
 0x17e   :  { %4480 = vmatpush3.bf16.msra.mxu1 %v5063_v56 }
 0x17f   :  { %3455 = vmatpush1.bf16.msra.mxu0 %v4976_v34  ;;  %4481 = vmatprep.subr.bf16.mxu1 %v5064_v58  ;;  %v5089_v34 = vld [vmem:[%s6617_s8 + $0xaa0] ss:$12 sps:$4 sm:$0xff]  }
 0x180   :  { %3456 = vmatprep.subr.bf16.mxu0 %v4983_v36  ;;  %v5091_v36 = vld [vmem:[%s6617_s8 + $0xab8] ss:$12 sps:$4 sm:$0xff]  }
 0x182   :  { %4482 = vmatpush3.bf16.msra.mxu1 %v5065_v61 }
 0x183   :  { %3457 = vmatpush1.bf16.msra.mxu0 %v4981_v40  ;;  %4483 = vmatprep.subr.bf16.mxu1 %v5066_v63  ;;  %v5095_v40 = vld [vmem:[%s6617_s8 + $0xae8] ss:$12 sps:$4 sm:$0xff]  }
 0x184   :  { %3458 = vmatprep.subr.bf16.mxu0 %v4988_v9  ;;  %v5097_v9 = vld [vmem:[%s6617_s8 + $0xb00] ss:$12 sps:$4 sm:$0xff]  }
 0x186   :  { %4484 = vmatpush3.bf16.msra.mxu1 %v5067_v0 }
 0x187   :  { %3459 = vmatpush1.bf16.msra.mxu0 %v4986_v18  ;;  %4485 = vmatprep.subr.bf16.mxu1 %v5068_v1  ;;  %v5099_v18 = vld [vmem:[%s6617_s8 + $0xb18] ss:$12 sps:$4 sm:$0xff]  }
 0x188   :  { %3460 = vmatprep.subr.bf16.mxu0 %v4993_v44  ;;  %v5101_v44 = vld [vmem:[%s6617_s8 + $0xb30] ss:$12 sps:$4 sm:$0xff]  }
 0x18a   :  { %4486 = vmatpush3.bf16.msra.mxu1 %v5069_v3 }
 0x18b   :  { %3461 = vmatpush1.bf16.msra.mxu0 %v4991_v47  ;;  %4493 = vmatprep.subr.bf16.mxu1 %v5070_v5  ;;  %v1083_v47 = vrot.slane %v1078_v45, %v5800_v17 }
 0x18d   :  { %3704 = vmatmul.mubr.bf16.vlgmr.msra.gmra.mrb[32].mxu1 %v6004_v7  ;;  %v5076_v7 = vld [vmem:[%s6617_s8 + $0xa10] ss:$12 sps:$4 sm:$0xff]   ;;  %v4552_v10 = vadd.f32 %v6450_v2, %v1083_v47 }
 0x18e   :  { %3463 = vmatmul.mubr.bf16.vlgmr.msra.gmra.mrb[8].mxu0 %v6417_v48  ;;  %4494 = vmatpush3.bf16.msra.mxu1 %v5071_v6 }
 0x18f   :  { %3743 = vmatprep.mubr.bf16.mxu1 %v6012_v57  ;;  %4495 = vmatprep.subr.bf16.mxu1 %v5072_v8  ;;  %v5077_v57 = vld [vmem:[%s6617_s8 + $0x950] ss:$12 sps:$4 sm:$0xff]  }
 0x192   :  { %4496 = vmatpush3.bf16.msra.mxu1 %v5073_v11 }
 0x193   :  { %4497 = vmatprep.subr.bf16.mxu1 %v5074_v14 }
 0x196   :  { %4498 = vmatpush3.bf16.msra.mxu1 %v5075_v16 }
 0x197   :  { %4499 = vmatprep.subr.bf16.mxu1 %v5076_v7 }
 0x19a   :  { %4500 = vmatpush3.bf16.msra.mxu1 %v5077_v57 }
 0x19b   :  { %4501 = vmatprep.subr.bf16.mxu1 %v5078_v55 }
 0x19e   :  { %4502 = vmatpush3.bf16.msra.mxu1 %v5079_v19 }
 0x19f   :  { %4503 = vmatprep.subr.bf16.mxu1 %v5080_v20 }
 0x1a2   :  { %4504 = vmatpush3.bf16.msra.mxu1 %v5081_v23 }
 0x1a3   :  { %4505 = vmatprep.subr.bf16.mxu1 %v5082_v24 }
 0x1a6   :  { %4506 = vmatpush3.bf16.msra.mxu1 %v5083_v49 }
 0x1a7   :  { %4507 = vmatprep.subr.bf16.mxu1 %v5084_v25 }
 0x1aa   :  { %4508 = vmatpush3.bf16.msra.mxu1 %v5085_v51 }
 0x1ab   :  { %4515 = vmatprep.subr.bf16.mxu1 %v5086_v29 }
 0x1ad   :  { %3744 = vmatmul.mubr.bf16.vlgmr.msra.gmra.mrb[36].mxu1 %v6215_v27  ;;  %v5092_v27 = vld [vmem:[%s6617_s8 + $0xb90] ss:$12 sps:$4 sm:$0xff]  }
 0x1ae   :  { %4516 = vmatpush3.bf16.msra.mxu1 %v5087_v30  ;;  %3783 = vmatprep.mubr.bf16.mxu1 %v6223_v32  ;;  %v5093_v32 = vld [vmem:[%s6617_s8 + $0xad0] ss:$12 sps:$4 sm:$0xff]   ;;  %s5110_s8 = smov 124  }
 0x1af   :  { %4517 = vmatprep.subr.bf16.mxu1 %v5088_v33 }
 0x1b2   :  { %4518 = vmatpush3.bf16.msra.mxu1 %v5089_v34 }
 0x1b3   :  { %4519 = vmatprep.subr.bf16.mxu1 %v5090_v35 }
 0x1b6   :  { %4520 = vmatpush3.bf16.msra.mxu1 %v5091_v36 }
 0x1b7   :  { %4521 = vmatprep.subr.bf16.mxu1 %v5092_v27 }
 0x1ba   :  { %4522 = vmatpush3.bf16.msra.mxu1 %v5093_v32 }
 0x1bb   :  { %4523 = vmatprep.subr.bf16.mxu1 %v5094_v38 }
 0x1be   :  { %4524 = vmatpush3.bf16.msra.mxu1 %v5095_v40 }
 0x1bf   :  { %4525 = vmatprep.subr.bf16.mxu1 %v5096_v41 }
 0x1c2   :  { %4526 = vmatpush3.bf16.msra.mxu1 %v5097_v9 }
 0x1c3   :  { %4527 = vmatprep.subr.bf16.mxu1 %v5098_v42 }
 0x1c6   :  { %4528 = vmatpush3.bf16.msra.mxu1 %v5099_v18 }
 0x1c7   :  { %4529 = vmatprep.subr.bf16.mxu1 %v5100_v43 }
 0x1ca   :  { %4530 = vmatpush3.bf16.msra.mxu1 %v5101_v44 }
 0x1cd   :  { %3784 = vmatmul.mubr.bf16.vlgmr.msra.gmra.mrb[40].mxu1 %v6417_v48 }
 0x261   :  { %v3464_v50 = vpop.f32.mrb[8].mxu0 }
 0x262   :  { %v4553_v52 = vadd.f32 %v4552_v10, %v3464_v50  ;;  %v3466_v53 = vpop.f32.mrb[9].mxu0 }
 0x263   :  { %v4555_v56 = vadd.f32 %v4554_v13, %v3466_v53  ;;  %v3468_v58 = vpop.f32.mrb[10].mxu0  ;;  %v3793_v53 = vpop.xlane.xlu0 %3792 }
 0x264   :  { %v3469_v61 = vpop.f32.mrb[11].mxu0  ;;  %v3800_v48 = vmul.f32 %v4553_v52, %v5829_v31  ;;  %v3812_v17 = vmul.f32 %v4553_v52, %v5842_v39  ;;  %v3824_v1 = vmul.f32 %v4553_v52, %v5870_v54  ;;  %v6572_v31 = vsub.s32 2, %v5783_v12  ;;  %v3808_v58 = vpop.xlane.xlu1 %3807 }
 0x265   :  { %v3827_v63 = vmul.f32 %v4555_v56, %v5826_v28  ;;  %v3836_v0 = vmul.f32 %v4555_v56, %v4553_v52  ;;  %v3833_v21 = vmul.f32 %v4555_v56, %v5857_v46  ;;  %v3830_v2 = vmul.f32 %v4555_v56, %v5840_v37  ;;  %v4377_v28 = vpop.f32.mrb[12].mxu1 }
 0x266   :  { %3801 = vadd.xlane.f32.xlu1 %v3800_v48  ;;  %v1091_v3 = vrot.slane %v1078_v45, %v6572_v31  ;;  %v4378_v4 = vpop.f32.mrb[13].mxu1 }
 0x267   :  { %3828 = vadd.xlane.f32.xlu0 %v3827_v63  ;;  %v4379_v5 = vadd.f32 %v4378_v4, %v4377_v28  ;;  %v4380_v39 = vpop.f32.mrb[14].mxu1  ;;  %v3796_v56 = vpop.xlane.xlu0 %3795 }
 0x268   :  { %v4381_v60 = vpop.f32.mrb[15].mxu1  ;;  %v3799_v48 = vpop.xlane.xlu1 %3798 }
 0x269   :  { %v3506_v46 = vadd.f32 %v4379_v5, %v1091_v3  ;;  %v4399_v62 = vpop.f32.mrb[16].mxu1 }
 0x26a   :  { %3813 = vadd.xlane.f32.xlu1 %v3812_v17  ;;  %v4400_v6 = vpop.f32.mrb[17].mxu1  ;;  %v3840_v17 = vsel %vm3839_vm3, %v3793_v53, %v3796_v56 }
 0x26b   :  { %3834 = vadd.xlane.f32.xlu0 %v3833_v21  ;;  %v4401_v8 = vadd.f32 %v4400_v6, %v4399_v62  ;;  %v4402_v54 = vpop.f32.mrb[18].mxu1  ;;  %v3805_v61 = vpop.xlane.xlu0 %3804 }
 0x26c   :  { %v4403_v11 = vpop.f32.mrb[19].mxu1 }
 0x26d   :  { %v3546_v14 = vadd.f32 %v4401_v8, %v3506_v46  ;;  %v4421_v37 = vpop.f32.mrb[20].mxu1 }
 0x26e   :  { %3825 = vadd.xlane.f32.xlu1 %v3824_v1  ;;  %v4422_v16 = vpop.f32.mrb[21].mxu1  ;;  %v3842_v1 = vsel %vm3841_vm4, %v3840_v17, %v3799_v48 }
 0x26f   :  { %v4423_v7 = vadd.f32 %v4422_v16, %v4421_v37  ;;  %v4424_v57 = vpop.f32.mrb[22].mxu1  ;;  %v3811_v63 = vpop.xlane.xlu0 %3810 }
 0x270   :  { %v4425_v12 = vpop.f32.mrb[23].mxu1 }
 0x271   :  { %v3586_v55 = vadd.f32 %v4423_v7, %v3546_v14  ;;  %v4443_v19 = vpop.f32.mrb[24].mxu1 }
 0x272   :  { %3831 = vadd.xlane.f32.xlu1 %v3830_v2  ;;  %v4444_v20 = vpop.f32.mrb[25].mxu1 }
 0x273   :  { %v4445_v23 = vadd.f32 %v4444_v20, %v4443_v19  ;;  %v4446_v24 = vpop.f32.mrb[26].mxu1  ;;  %v3817_v21 = vpop.xlane.xlu0 %3816 }
 0x274   :  { %v4447_v49 = vpop.f32.mrb[27].mxu1 }
 0x275   :  { %v3626_v25 = vadd.f32 %v4445_v23, %v3586_v55  ;;  %v4465_v51 = vpop.f32.mrb[28].mxu1 }
 0x276   :  { %3837 = vadd.xlane.f32.xlu1 %v3836_v0  ;;  %v4466_v29 = vpop.f32.mrb[29].mxu1  ;;  %v3820_v0 = vpop.xlane.xlu1 %3819 }
 0x277   :  { %v4467_v30 = vadd.f32 %v4466_v29, %v4465_v51  ;;  %v4468_v33 = vpop.f32.mrb[30].mxu1  ;;  %v3823_v60 = vpop.xlane.xlu0 %3822 }
 0x278   :  { %v4469_v34 = vpop.f32.mrb[31].mxu1 }
 0x279   :  { %v3666_v35 = vadd.f32 %v4467_v30, %v3626_v25  ;;  %v4487_v36 = vpop.f32.mrb[32].mxu1  ;;  %v5106_v25 = vld [vmem:[%s6622_s5] sm:$0x7] }
 0x27a   :  { %v4488_v27 = vpop.f32.mrb[33].mxu1  ;;  %v232_v51 = vrot.slane %v5106_v25, %v6572_v31 }
 0x27b   :  { %v4489_v32 = vadd.f32 %v4488_v27, %v4487_v36  ;;  %v4490_v38 = vpop.f32.mrb[34].mxu1 }
 0x27c   :  { %v4491_v40 = vpop.f32.mrb[35].mxu1  ;;  %v531_v29 = vadd.f32 %v6074_v26, %v232_v51  ;;  %v386_v30 = vadd.f32 %v6066_v22, %v232_v51  ;;  %v5107_v26 = vld [vmem:[%s6621_s7] sm:$0x7]  ;;  %s5115_s7 = smov 116  }
 0x27d   :  { %v3706_v41 = vadd.f32 %v4489_v32, %v3666_v35  ;;  %v57_v22 = vrot.slane %v5107_v26, %v6572_v31 }
 0x280   :  { %v4509_v9 = vpop.f32.mrb[36].mxu1 }
 0x281   :  { %v4510_v42 = vpop.f32.mrb[37].mxu1 }
 0x282   :  { %v4511_v18 = vadd.f32 %v4510_v42, %v4509_v9  ;;  %v4512_v43 = vpop.f32.mrb[38].mxu1  ;;  %v213_v9 = vadd.f32 %v6055_v15, %v57_v22  ;;  %v16_v15 = vstv %s6624_s10 }
 0x283   :  { %v4513_v44 = vpop.f32.mrb[39].mxu1  ;;  %17 = vst [vmem:[#allocation2] sm:$0x1] %v16_v15 }
 0x284   :  { %v3746_v45 = vadd.f32 %v4511_v18, %v3706_v41 }
 0x2a0   :  { %v4531_v47 = vpop.f32.mrb[40].mxu1 }
 0x2a1   :  { %v4532_v59 = vpop.f32.mrb[41].mxu1 }
 0x2a2   :  { %v4533_v10 = vadd.f32 %v4532_v59, %v4531_v47  ;;  %v4534_v13 = vpop.f32.mrb[42].mxu1 }
 0x2a3   :  { %v4535_v50 = vpop.f32.mrb[43].mxu1 }
 0x2a4   :  { %v6575_v52 = vadd.f32 %v4533_v10, %v3746_v45 }
 0x2f3   :  { %v3802_v2 = vpop.xlane.xlu1 %3801 }
 0x2f4   :  { %v3843_v28 = vsel %vm64_vm1, %v3842_v1, %v3802_v2  ;;  %v3829_v11 = vpop.xlane.xlu0 %3828 }
 0x2f5   :  { %v3845_v3 = vsel %vm3844_vm5, %v3843_v28, %v3805_v61  ;;  %v4354_v28 = vld [vmem:[#allocation2] ss:$0 sm:$0xff] }
 0x2f6   :  { %v3847_v4 = vsel %vm3846_vm6, %v3845_v3, %v3808_v58 }
 0x2f7   :  { %v3814_v5 = vpop.xlane.xlu1 %3813  ;;  %v3849_v39 = vsel %vm3848_vm7, %v3847_v4, %v3811_v63 }
 0x2f8   :  { %v3851_v46 = vsel %vm3850_vm8, %v3849_v39, %v3814_v5  ;;  %v3835_v57 = vpop.xlane.xlu0 %3834 }
 0x2f9   :  { %v3853_v62 = vsel %vm3852_vm9, %v3851_v46, %v3817_v21 }
 0x2fa   :  { %v3855_v6 = vsel %vm3854_vm10, %v3853_v62, %v3820_v0 }
 0x2fb   :  { %v3826_v8 = vpop.xlane.xlu1 %3825  ;;  %v3857_v54 = vsel %vm3856_vm11, %v3855_v6, %v3823_v60 }
 0x2fc   :  { %v3859_v14 = vsel %vm3858_vm12, %v3857_v54, %v3826_v8 }
 0x2fd   :  { %v3861_v16 = vsel %vm3860_vm13, %v3859_v14, %v3829_v11 }
 0x2ff   :  { %v3832_v37 = vpop.xlane.xlu1 %3831 }
 0x300   :  { %v3863_v7 = vsel %vm3862_vm14, %v3861_v16, %v3832_v37 }
 0x301   :  { %v3865_v55 = vsel %vm3864_vm15, %v3863_v7, %v3835_v57 }
 0x303   :  { %v3838_v12 = vpop.xlane.xlu1 %3837 }
 0x304   :  { %v3867_v19 = vsel %vm3866_vm0, %v3865_v55, %v3838_v12 }
 0x305   :  { %3869 = vrot.lane.b32.xlu0 %v3867_v19, %s5110_s8 }
 0x377   :  { %v3870_v20 = vpop.permute.xlu0 %3869 }
 0x378   :  { %v3872_v23 = vmax.f32 %v3867_v19, %v3870_v20 }
 0x37a   :  { %3874 = vrot.lane.b32.xlu1 %v3872_v23, %s5111_s9 }
 0x3ec   :  { %v3875_v24 = vpop.permute.xlu1 %3874 }
 0x3ed   :  { %v3877_v49 = vmax.f32 %v3872_v23, %v3875_v24 }
 0x3ef   :  { %3885 = vrot.lane.b32.xlu0 %v3877_v49, %s5112_s2  ;;  %3879 = vrot.lane.b32.xlu1 %v3877_v49, %s5113_s25 }
 0x3f3   :  { %3899 = vrot.lane.b32.xlu0 %v531_v29, %s5114_s6  ;;  %3882 = vrot.lane.b32.xlu1 %v3877_v49, %s5114_s6 }
 0x3f7   :  { %3895 = vrot.lane.b32.xlu1 %v386_v30, %s5113_s25 }
 0x3fb   :  { %3903 = vrot.lane.b32.xlu1 %v6575_v52, %s5112_s2 }
 0x461   :  { %v3880_v33 = vpop.permute.xlu1 %3879  ;;  %v3886_v36 = vpop.permute.xlu0 %3885 }
 0x462   :  { %v3888_v34 = vsel %vm3844_vm5, %v3877_v49, %v3880_v33 }
 0x465   :  { %v3883_v35 = vpop.permute.xlu1 %3882  ;;  %v3900_v44 = vpop.permute.xlu0 %3899 }
 0x466   :  { %v3889_v27 = vsel %vm3852_vm9, %v3888_v34, %v3883_v35 }
 0x467   :  { %v3890_v32 = vsel %vm3860_vm13, %v3889_v27, %v3886_v36 }
 0x468   :  { %v3891_v38 = vsub.f32 %v3867_v19, %v3890_v32 }
 0x469   :  { %v3896_v41 = vpop.permute.xlu1 %3895 }
 0x46a   :  { %v3892_v40 = vmul.f32 1.442695, %v3891_v38  ;;  %v3906_v42 = vsel %vm3844_vm5, %v213_v9, %v3896_v41 }
 0x46b   :  { %v3907_v45 = vsel %vm3852_vm9, %v3906_v42, %v3900_v44 }
 0x46c   :  { %5102 = vpow2.f32 %v3892_v40 }
 0x46d   :  { %v3904_v18 = vpop.permute.xlu1 %3903 }
 0x46e   :  { %v3908_v47 = vsel %vm3860_vm13, %v3907_v45, %v3904_v18 }
 0x476   :  { %v5103_v43 = vpop.eup %5102 }
 0x477   :  { %3915 = vrot.lane.b32.xlu1 %v5103_v43, %s5111_s9  ;;  %3911 = vrot.lane.b32.xlu0 %v5103_v43, %s5110_s8  ;;  %v3909_v59 = vmul.f32 %v5103_v43, %v3908_v47 }
 0x47b   :  { %3919 = vrot.lane.b32.xlu0 %v5103_v43, %s5115_s7  ;;  %3924 = vrot.lane.b32.xlu1 %v3909_v59, %s5110_s8 }
 0x47f   :  { %3928 = vrot.lane.b32.xlu0 %v3909_v59, %s5111_s9  ;;  %3932 = vrot.lane.b32.xlu1 %v3909_v59, %s5115_s7 }
 0x4e9   :  { %v3912_v31 = vpop.permute.xlu0 %3911  ;;  %v3916_v13 = vpop.permute.xlu1 %3915 }
 0x4ea   :  { %v3914_v10 = vadd.f32 %v5103_v43, %v3912_v31 }
 0x4ec   :  { %v3918_v50 = vadd.f32 %v3916_v13, %v3914_v10 }
 0x4ed   :  { %v3920_v52 = vpop.permute.xlu0 %3919  ;;  %v3925_v56 = vpop.permute.xlu1 %3924 }
 0x4ee   :  { %v3922_v53 = vadd.f32 %v3920_v52, %v3918_v50  ;;  %v3927_v61 = vadd.f32 %v3925_v56, %v3909_v59 }
 0x4f0   :  { %5104 = vrcp.f32 %v3922_v53 }
 0x4f1   :  { %v3929_v58 = vpop.permute.xlu0 %3928  ;;  %v3933_v0 = vpop.permute.xlu1 %3932 }
 0x4f2   :  { %v3931_v48 = vadd.f32 %v3929_v58, %v3927_v61 }
 0x4f4   :  { %v3935_v21 = vadd.f32 %v3933_v0, %v3931_v48 }
 0x4fa   :  { %v5105_v63 = vpop.eup %5104 }
 0x4fb   :  { %v3937_v17 = vmul.f32 11.313708, %v5105_v63 }
 0x4fd   :  { %v3938_v1 = vmul.f32 %v3937_v17, %v3935_v21 }
 0x4ff   :  { %v3939_v2 = vsel %vm3844_vm5, %v3938_v1, 0.0 }
 0x500   :  { %3940 = vadd.xlane.f32.xlu0 %v3939_v2 }
 0x58d   :  { %v3941_v3 = vpop.xlane.xlu0 %3940 }
 0x58e   :  { %v3949_v4 = vadd.f32 %v4354_v28, %v3941_v3 }
 0x590   :  { %3950 = vst.msk [vmem:[%s6625_s11] sm:$0xff] %vm3839_vm3, %v3949_v4 }

</bundles_post_ra>
